<compile_context>
chip_gen: v6e
topology: v6e:2x2x1
jax: 0.10.0
libtpu: 0.0.40
codegen_flags: <defaults>
</compile_context>

<pallas_src>
import jax
import jax.numpy as jnp
from jax.experimental import pallas as pl
from jax.experimental.pallas import tpu as pltpu

DENSITY = 512


def _round_up(x, m):
    return ((x + m - 1) // m) * m


def critic_kernel(s_ref, a_ref,
                  w1s_ref, w1a_ref, b1_ref,
                  w2_ref, b2_ref,
                  w3_ref, b3_ref,
                  w4_ref, b4_ref,
                  wq_ref, bq_ref,
                  out_ref):
    # H1 + ReLU.  Fused concat: cat(s, a) @ W1 == s @ W1[:S] + a @ W1[S:].
    h = jnp.dot(s_ref[...].astype(jnp.bfloat16), w1s_ref[...],
                preferred_element_type=jnp.float32)
    h += jnp.dot(a_ref[...].astype(jnp.bfloat16), w1a_ref[...],
                 preferred_element_type=jnp.float32)
    h = jnp.maximum(h + b1_ref[...], 0.0)

    # H2 + ReLU
    h = jnp.dot(h.astype(jnp.bfloat16), w2_ref[...],
                preferred_element_type=jnp.float32)
    h = jnp.maximum(h + b2_ref[...], 0.0)

    # Dropout(p=0.1) -> identity in eval mode.
    # TODO(synk): training-mode dropout would need pltpu.prng_random_bits + mask.

    # H3 + ReLU
    h = jnp.dot(h.astype(jnp.bfloat16), w3_ref[...],
                preferred_element_type=jnp.float32)
    h = jnp.maximum(h + b3_ref[...], 0.0)

    # H4 + ReLU
    h = jnp.dot(h.astype(jnp.bfloat16), w4_ref[...],
                preferred_element_type=jnp.float32)
    h = jnp.maximum(h + b4_ref[...], 0.0)

    # Q head (density -> 1): VPU multiply + XLU lane reduce instead of an
    # N=1 MXU matmul.
    wq = wq_ref[...].astype(jnp.float32)           # (1, D) broadcast row
    q = jnp.sum(h * wq, axis=-1, keepdims=True)    # (TB, 1)
    out_ref[...] = q + bq_ref[...]


def critic_forward(state, action, params):
    """state: (B, S), action: (B, A)  ->  (B, 1) Q-value."""
    B, S = state.shape
    A = action.shape[1]
    (w1, b1), (w2, b2), (w3, b3), (w4, b4), (wq, bq) = params
    D = w1.shape[1]

    state = state.astype(jnp.float32)
    action = action.astype(jnp.float32)

    # Split W1 so torch.cat((state, action)) never materializes through HBM.
    w1s = w1[:S]
    w1a = w1[S:]
    wq_row = wq.reshape(1, D)

    # Batch tile: large tile for MXU M-utilization when B is big; pad B up.
    tb = min(256, _round_up(B, 8))
    b_pad = _round_up(B, tb)
    if b_pad != B:
        pad = b_pad - B
        state = jnp.pad(state, ((0, pad), (0, 0)))
        action = jnp.pad(action, ((0, pad), (0, 0)))

    grid = (b_pad // tb,)

    def tiled(shape):        # batch-tiled operand, pipelined per grid step
        return pl.BlockSpec(shape, lambda i: (i, 0))

    def resident(shape):     # same block every step -> stays VMEM-resident
        return pl.BlockSpec(shape, lambda i: (0, 0))

    out = pl.pallas_call(
        critic_kernel,
        out_shape=jax.ShapeDtypeStruct((b_pad, 1), jnp.float32),
        grid=grid,
        in_specs=[
            tiled((tb, S)), tiled((tb, A)),
            resident((S, D)), resident((A, D)), resident((1, D)),
            resident((D, D)), resident((1, D)),
            resident((D, D)), resident((1, D)),
            resident((D, D)), resident((1, D)),
            resident((1, D)), resident((1, 1)),
        ],
        out_specs=tiled((tb, 1)),
        compiler_params=pltpu.CompilerParams(
            dimension_semantics=("parallel",),   # megacore sharding on v7x
            vmem_limit_bytes=16 << 20,
        ),
    )(state, action, w1s, w1a, b1, w2, b2, w3, b3, w4, b4, wq_row, bq)
    return out[:B]


def init_params(key, input_dim, density=DENSITY):
    """torch.nn.Linear-style init: U(-1/sqrt(fan_in), 1/sqrt(fan_in)).

    Weights are stored bf16 (memory-bound kernel: halves HBM->VMEM bytes),
    biases stay f32.
    """
    def linear(key, fan_in, fan_out):
        kw, kb = jax.random.split(key)
        bound = 1.0 / jnp.sqrt(jnp.float32(fan_in))
        w = jax.random.uniform(kw, (fan_in, fan_out), jnp.float32, -bound, bound)
        b = jax.random.uniform(kb, (1, fan_out), jnp.float32, -bound, bound)
        return w.astype(jnp.bfloat16), b

    keys = jax.random.split(key, 5)
    return [
        linear(keys[0], input_dim, density),   # H1
        linear(keys[1], density, density),     # H2
        linear(keys[2], density, density),     # H3
        linear(keys[3], density, density),     # H4
        linear(keys[4], density, 1),           # Q
    ]


def critic_reference(state, action, params):
    """Pure-JAX reference mirroring the kernel's bf16-weight numerics."""
    (w1, b1), (w2, b2), (w3, b3), (w4, b4), (wq, bq) = params
    x = jnp.concatenate([state, action], axis=1).astype(jnp.bfloat16)
    h = jnp.maximum(jnp.dot(x, w1, preferred_element_type=jnp.float32) + b1, 0.0)
    h = jnp.maximum(jnp.dot(h.astype(jnp.bfloat16), w2,
                            preferred_element_type=jnp.float32) + b2, 0.0)
    h = jnp.maximum(jnp.dot(h.astype(jnp.bfloat16), w3,
                            preferred_element_type=jnp.float32) + b3, 0.0)
    h = jnp.maximum(jnp.dot(h.astype(jnp.bfloat16), w4,
                            preferred_element_type=jnp.float32) + b4, 0.0)
    wq_row = wq.reshape(1, -1).astype(jnp.float32)
    return jnp.sum(h * wq_row, axis=-1, keepdims=True) + bq


if __name__ == "__main__":
    key = jax.random.PRNGKey(0)
    k_state, k_action, k_params = jax.random.split(key, 3)

    B = 8            # batch (multiple of 8 sublanes)
    state_dim = 24
    action_dim = 8
    input_dim = state_dim + action_dim  # 32

    state = jax.random.normal(k_state, (B, state_dim), jnp.float32)
    action = jax.random.normal(k_action, (B, action_dim), jnp.float32)
    params = init_params(k_params, input_dim)

    q = jax.block_until_ready(critic_forward(state, action, params))
    q_ref = critic_reference(state, action, params)

    assert q.shape == (B, 1)
    assert jnp.allclose(q, q_ref, atol=1e-2, rtol=1e-2), "mismatch vs reference"

    print("KERNEL_OK")
</pallas_src>

<mosaic_0001>
module attributes {stable_mosaic.version = 11 : i64} {
  func.func @critic_kernel(%arg0: i32, %arg1: memref<8x24xf32, #tpu.memory_space<vmem>>, %arg2: memref<8x8xf32, #tpu.memory_space<vmem>>, %arg3: memref<24x512xbf16, #tpu.memory_space<vmem>>, %arg4: memref<8x512xbf16, #tpu.memory_space<vmem>>, %arg5: memref<1x512xf32, #tpu.memory_space<vmem>>, %arg6: memref<512x512xbf16, #tpu.memory_space<vmem>>, %arg7: memref<1x512xf32, #tpu.memory_space<vmem>>, %arg8: memref<512x512xbf16, #tpu.memory_space<vmem>>, %arg9: memref<1x512xf32, #tpu.memory_space<vmem>>, %arg10: memref<512x512xbf16, #tpu.memory_space<vmem>>, %arg11: memref<1x512xf32, #tpu.memory_space<vmem>>, %arg12: memref<1x512xbf16, #tpu.memory_space<vmem>>, %arg13: memref<1x1xf32, #tpu.memory_space<vmem>>, %arg14: memref<8x1xf32, #tpu.memory_space<vmem>>) attributes {dimension_semantics = [#tpu.dimension_semantics<parallel>], iteration_bounds = array<i64: 1>, scalar_prefetch = 0 : i64, scratch_operands = 0 : i64, tpu.core_type = #tpu.core_type<tc>, window_params = [{transform_indices = @transform_0, window_bounds = array<i64: 8, 24>}, {transform_indices = @transform_1, window_bounds = array<i64: 8, 8>}, {pipeline_mode = #tpu.pipeline_mode<synchronous>, transform_indices = @transform_2, window_bounds = array<i64: 24, 512>}, {pipeline_mode = #tpu.pipeline_mode<synchronous>, transform_indices = @transform_3, window_bounds = array<i64: 8, 512>}, {pipeline_mode = #tpu.pipeline_mode<synchronous>, transform_indices = @transform_4, window_bounds = array<i64: 1, 512>}, {pipeline_mode = #tpu.pipeline_mode<synchronous>, transform_indices = @transform_5, window_bounds = array<i64: 512, 512>}, {pipeline_mode = #tpu.pipeline_mode<synchronous>, transform_indices = @transform_6, window_bounds = array<i64: 1, 512>}, {pipeline_mode = #tpu.pipeline_mode<synchronous>, transform_indices = @transform_7, window_bounds = array<i64: 512, 512>}, {pipeline_mode = #tpu.pipeline_mode<synchronous>, transform_indices = @transform_8, window_bounds = array<i64: 1, 512>}, {pipeline_mode = #tpu.pipeline_mode<synchronous>, transform_indices = @transform_9, window_bounds = array<i64: 512, 512>}, {pipeline_mode = #tpu.pipeline_mode<synchronous>, transform_indices = @transform_10, window_bounds = array<i64: 1, 512>}, {pipeline_mode = #tpu.pipeline_mode<synchronous>, transform_indices = @transform_11, window_bounds = array<i64: 1, 512>}, {pipeline_mode = #tpu.pipeline_mode<synchronous>, transform_indices = @transform_12, window_bounds = array<i64: 1, 1>}, {transform_indices = @transform_13, window_bounds = array<i64: 8, 1>}]} {
    %c0 = arith.constant 0 : index
    %c0_0 = arith.constant 0 : index
    %0 = vector.load %arg1[%c0, %c0_0] : memref<8x24xf32, #tpu.memory_space<vmem>>, vector<8x24xf32>
    %1 = arith.truncf %0 : vector<8x24xf32> to vector<8x24xbf16>
    %c0_1 = arith.constant 0 : index
    %c0_2 = arith.constant 0 : index
    %2 = vector.load %arg3[%c0_1, %c0_2] : memref<24x512xbf16, #tpu.memory_space<vmem>>, vector<24x512xbf16>
    %cst = arith.constant dense<0.000000e+00> : vector<8x512xf32>
    %3 = tpu.matmul %1, %2, %cst {dimension_numbers = #tpu.dot_dimension_numbers<[1], [0], [0], [1], [0, 0, 1, 1], [], []>} : vector<8x24xbf16>, vector<24x512xbf16>, vector<8x512xf32> -> vector<8x512xf32>
    %c0_3 = arith.constant 0 : index
    %c0_4 = arith.constant 0 : index
    %4 = vector.load %arg2[%c0_3, %c0_4] : memref<8x8xf32, #tpu.memory_space<vmem>>, vector<8x8xf32>
    %5 = arith.truncf %4 : vector<8x8xf32> to vector<8x8xbf16>
    %c0_5 = arith.constant 0 : index
    %c0_6 = arith.constant 0 : index
    %6 = vector.load %arg4[%c0_5, %c0_6] : memref<8x512xbf16, #tpu.memory_space<vmem>>, vector<8x512xbf16>
    %cst_7 = arith.constant dense<0.000000e+00> : vector<8x512xf32>
    %7 = tpu.matmul %5, %6, %cst_7 {dimension_numbers = #tpu.dot_dimension_numbers<[1], [0], [0], [1], [0, 0, 1, 1], [], []>} : vector<8x8xbf16>, vector<8x512xbf16>, vector<8x512xf32> -> vector<8x512xf32>
    %8 = arith.addf %3, %7 : vector<8x512xf32>
    %c0_8 = arith.constant 0 : index
    %c0_9 = arith.constant 0 : index
    %9 = vector.load %arg5[%c0_8, %c0_9] : memref<1x512xf32, #tpu.memory_space<vmem>>, vector<1x512xf32>
    %10 = vector.broadcast %9 : vector<1x512xf32> to vector<8x512xf32>
    %11 = arith.addf %8, %10 : vector<8x512xf32>
    %cst_10 = arith.constant 0.000000e+00 : f32
    %12 = vector.broadcast %cst_10 : f32 to vector<8x512xf32>
    %13 = arith.maximumf %11, %12 : vector<8x512xf32>
    %14 = arith.truncf %13 : vector<8x512xf32> to vector<8x512xbf16>
    %c0_11 = arith.constant 0 : index
    %c0_12 = arith.constant 0 : index
    %15 = vector.load %arg6[%c0_11, %c0_12] : memref<512x512xbf16, #tpu.memory_space<vmem>>, vector<512x512xbf16>
    %cst_13 = arith.constant dense<0.000000e+00> : vector<8x512xf32>
    %16 = tpu.matmul %14, %15, %cst_13 {dimension_numbers = #tpu.dot_dimension_numbers<[1], [0], [0], [1], [0, 0, 1, 1], [], []>} : vector<8x512xbf16>, vector<512x512xbf16>, vector<8x512xf32> -> vector<8x512xf32>
    %c0_14 = arith.constant 0 : index
    %c0_15 = arith.constant 0 : index
    %17 = vector.load %arg7[%c0_14, %c0_15] : memref<1x512xf32, #tpu.memory_space<vmem>>, vector<1x512xf32>
    %18 = vector.broadcast %17 : vector<1x512xf32> to vector<8x512xf32>
    %19 = arith.addf %16, %18 : vector<8x512xf32>
    %cst_16 = arith.constant 0.000000e+00 : f32
    %20 = vector.broadcast %cst_16 : f32 to vector<8x512xf32>
    %21 = arith.maximumf %19, %20 : vector<8x512xf32>
    %22 = arith.truncf %21 : vector<8x512xf32> to vector<8x512xbf16>
    %c0_17 = arith.constant 0 : index
    %c0_18 = arith.constant 0 : index
    %23 = vector.load %arg8[%c0_17, %c0_18] : memref<512x512xbf16, #tpu.memory_space<vmem>>, vector<512x512xbf16>
    %cst_19 = arith.constant dense<0.000000e+00> : vector<8x512xf32>
    %24 = tpu.matmul %22, %23, %cst_19 {dimension_numbers = #tpu.dot_dimension_numbers<[1], [0], [0], [1], [0, 0, 1, 1], [], []>} : vector<8x512xbf16>, vector<512x512xbf16>, vector<8x512xf32> -> vector<8x512xf32>
    %c0_20 = arith.constant 0 : index
    %c0_21 = arith.constant 0 : index
    %25 = vector.load %arg9[%c0_20, %c0_21] : memref<1x512xf32, #tpu.memory_space<vmem>>, vector<1x512xf32>
    %26 = vector.broadcast %25 : vector<1x512xf32> to vector<8x512xf32>
    %27 = arith.addf %24, %26 : vector<8x512xf32>
    %cst_22 = arith.constant 0.000000e+00 : f32
    %28 = vector.broadcast %cst_22 : f32 to vector<8x512xf32>
    %29 = arith.maximumf %27, %28 : vector<8x512xf32>
    %30 = arith.truncf %29 : vector<8x512xf32> to vector<8x512xbf16>
    %c0_23 = arith.constant 0 : index
    %c0_24 = arith.constant 0 : index
    %31 = vector.load %arg10[%c0_23, %c0_24] : memref<512x512xbf16, #tpu.memory_space<vmem>>, vector<512x512xbf16>
    %cst_25 = arith.constant dense<0.000000e+00> : vector<8x512xf32>
    %32 = tpu.matmul %30, %31, %cst_25 {dimension_numbers = #tpu.dot_dimension_numbers<[1], [0], [0], [1], [0, 0, 1, 1], [], []>} : vector<8x512xbf16>, vector<512x512xbf16>, vector<8x512xf32> -> vector<8x512xf32>
    %c0_26 = arith.constant 0 : index
    %c0_27 = arith.constant 0 : index
    %33 = vector.load %arg11[%c0_26, %c0_27] : memref<1x512xf32, #tpu.memory_space<vmem>>, vector<1x512xf32>
    %34 = vector.broadcast %33 : vector<1x512xf32> to vector<8x512xf32>
    %35 = arith.addf %32, %34 : vector<8x512xf32>
    %cst_28 = arith.constant 0.000000e+00 : f32
    %36 = vector.broadcast %cst_28 : f32 to vector<8x512xf32>
    %37 = arith.maximumf %35, %36 : vector<8x512xf32>
    %c0_29 = arith.constant 0 : index
    %c0_30 = arith.constant 0 : index
    %38 = vector.load %arg12[%c0_29, %c0_30] : memref<1x512xbf16, #tpu.memory_space<vmem>>, vector<1x512xbf16>
    %39 = arith.extf %38 : vector<1x512xbf16> to vector<1x512xf32>
    %40 = vector.broadcast %39 : vector<1x512xf32> to vector<8x512xf32>
    %41 = arith.mulf %37, %40 : vector<8x512xf32>
    %cst_31 = arith.constant dense<0.000000e+00> : vector<8xf32>
    %42 = vector.multi_reduction <add>, %41, %cst_31 [1] : vector<8x512xf32> to vector<8xf32>
    %43 = vector.shape_cast %42 : vector<8xf32> to vector<8x1xf32>
    %c0_32 = arith.constant 0 : index
    %c0_33 = arith.constant 0 : index
    %44 = vector.load %arg13[%c0_32, %c0_33] : memref<1x1xf32, #tpu.memory_space<vmem>>, vector<1x1xf32>
    %45 = vector.broadcast %44 : vector<1x1xf32> to vector<8x1xf32>
    %46 = arith.addf %43, %45 : vector<8x1xf32>
    %c0_34 = arith.constant 0 : index
    %c0_35 = arith.constant 0 : index
    %47 = vector.load %arg14[%c0_34, %c0_35] : memref<8x1xf32, #tpu.memory_space<vmem>>, vector<8x1xf32>
    tpu.vector_store %arg14[%c0_34, %c0_35], %46 {strides = array<i32>} : memref<8x1xf32, #tpu.memory_space<vmem>>, vector<8x1xf32>,
    return
  }
  func.func @transform_0(%arg0: i32) -> (i32, i32) {
    %c0_i32 = arith.constant 0 : i32
    %c0_i32_0 = arith.constant 0 : i32
    return %arg0, %c0_i32 : i32, i32
  }
  func.func @transform_1(%arg0: i32) -> (i32, i32) {
    %c0_i32 = arith.constant 0 : i32
    %c0_i32_0 = arith.constant 0 : i32
    return %arg0, %c0_i32 : i32, i32
  }
  func.func @transform_2(%arg0: i32) -> (i32, i32) {
    %c0_i32 = arith.constant 0 : i32
    %c0_i32_0 = arith.constant 0 : i32
    %c0_i32_1 = arith.constant 0 : i32
    return %c0_i32, %c0_i32_0 : i32, i32
  }
  func.func @transform_3(%arg0: i32) -> (i32, i32) {
    %c0_i32 = arith.constant 0 : i32
    %c0_i32_0 = arith.constant 0 : i32
    %c0_i32_1 = arith.constant 0 : i32
    return %c0_i32, %c0_i32_0 : i32, i32
  }
  func.func @transform_4(%arg0: i32) -> (i32, i32) {
    %c0_i32 = arith.constant 0 : i32
    %c0_i32_0 = arith.constant 0 : i32
    %c0_i32_1 = arith.constant 0 : i32
    return %c0_i32, %c0_i32_0 : i32, i32
  }
  func.func @transform_5(%arg0: i32) -> (i32, i32) {
    %c0_i32 = arith.constant 0 : i32
    %c0_i32_0 = arith.constant 0 : i32
    %c0_i32_1 = arith.constant 0 : i32
    return %c0_i32, %c0_i32_0 : i32, i32
  }
  func.func @transform_6(%arg0: i32) -> (i32, i32) {
    %c0_i32 = arith.constant 0 : i32
    %c0_i32_0 = arith.constant 0 : i32
    %c0_i32_1 = arith.constant 0 : i32
    return %c0_i32, %c0_i32_0 : i32, i32
  }
  func.func @transform_7(%arg0: i32) -> (i32, i32) {
    %c0_i32 = arith.constant 0 : i32
    %c0_i32_0 = arith.constant 0 : i32
    %c0_i32_1 = arith.constant 0 : i32
    return %c0_i32, %c0_i32_0 : i32, i32
  }
  func.func @transform_8(%arg0: i32) -> (i32, i32) {
    %c0_i32 = arith.constant 0 : i32
    %c0_i32_0 = arith.constant 0 : i32
    %c0_i32_1 = arith.constant 0 : i32
    return %c0_i32, %c0_i32_0 : i32, i32
  }
  func.func @transform_9(%arg0: i32) -> (i32, i32) {
    %c0_i32 = arith.constant 0 : i32
    %c0_i32_0 = arith.constant 0 : i32
    %c0_i32_1 = arith.constant 0 : i32
    return %c0_i32, %c0_i32_0 : i32, i32
  }
  func.func @transform_10(%arg0: i32) -> (i32, i32) {
    %c0_i32 = arith.constant 0 : i32
    %c0_i32_0 = arith.constant 0 : i32
    %c0_i32_1 = arith.constant 0 : i32
    return %c0_i32, %c0_i32_0 : i32, i32
  }
  func.func @transform_11(%arg0: i32) -> (i32, i32) {
    %c0_i32 = arith.constant 0 : i32
    %c0_i32_0 = arith.constant 0 : i32
    %c0_i32_1 = arith.constant 0 : i32
    return %c0_i32, %c0_i32_0 : i32, i32
  }
  func.func @transform_12(%arg0: i32) -> (i32, i32) {
    %c0_i32 = arith.constant 0 : i32
    %c0_i32_0 = arith.constant 0 : i32
    %c0_i32_1 = arith.constant 0 : i32
    return %c0_i32, %c0_i32_0 : i32, i32
  }
  func.func @transform_13(%arg0: i32) -> (i32, i32) {
    %c0_i32 = arith.constant 0 : i32
    %c0_i32_0 = arith.constant 0 : i32
    return %arg0, %c0_i32 : i32, i32
  }
}

</mosaic_0001>

<bundles_post_ra>
// kernel: tpu_custom_call.1
= control target key start
LH: loop header
LB: loop body
LE: loop exit
PB: predicated region body
PF: predicated region fallthrough
CT: control target
= control target key end

     0   :  { %s4742_s0 = inlined_call_operand.hbm [shape: f32[8,24], index: 0, kind: input, shape index: {}]   ;;  %s4743_s1 = inlined_call_operand.hbm [shape: f32[8,8], index: 1, kind: input, shape index: {}]   ;;  %s4744_s2 = inlined_call_operand.hbm [shape: bf16[24,512], index: 2, kind: input, shape index: {}]   ;;  %s4745_s3 = inlined_call_operand.hbm [shape: bf16[8,512], index: 3, kind: input, shape index: {}]   ;;  %s4746_s4 = inlined_call_operand.vmem [shape: f32[1,512], index: 4, kind: input, shape index: {}]   ;;  %s4747_s5 = inlined_call_operand.hbm [shape: bf16[512,512], index: 5, kind: input, shape index: {}]   ;;  %s4748_s6 = inlined_call_operand.vmem [shape: f32[1,512], index: 6, kind: input, shape index: {}]   ;;  %s4749_s7 = inlined_call_operand.hbm [shape: bf16[512,512], index: 7, kind: input, shape index: {}]   ;;  %s4750_s8 = inlined_call_operand.vmem [shape: f32[1,512], index: 8, kind: input, shape index: {}]   ;;  %s4751_s9 = inlined_call_operand.hbm [shape: bf16[512,512], index: 9, kind: input, shape index: {}]   ;;  %s4752_s10 = inlined_call_operand.vmem [shape: f32[1,512], index: 10, kind: input, shape index: {}]   ;;  %s4753_s11 = inlined_call_operand.vmem [shape: bf16[1,512], index: 11, kind: input, shape index: {}]   ;;  %s4754_s12 = inlined_call_operand.<no memory space> [shape: f32[1,1], index: 12, kind: input, shape index: {}]   ;;  %s4755_s13 = inlined_call_operand.vmem [shape: f32[8,1], index: 13, kind: output, shape index: {}]  }
   0x1   :  { %v18_v0 = vstv %s4754_s12 }
   0x2   :  { %19 = vst [vmem:[#allocation2] sm:$0x1] %v18_v0 }
   0x3   :  { %20 = vsyncpa [#allocation4], 0 }
   0x4   :  { %21 = vsyncpa [#allocation6], 0 }
   0x5   :  { %22 = vsyncpa [#allocation9], 0 }
   0x6   :  { %23 = vsyncpa [#allocation12], 0  ;;  %s4520_s27 = smov [#allocation5]   ;;  %s4521_s29 = smov [#allocation8]  }
   0x7   :  { %s40_s28 = sshll.u32 %s4520_s27, 4  ;;  %s62_s30 = sshll.u32 %s4521_s29, 4  ;;  %s41_s28 = int_to_ptr.vmem [resolvable:$true] %s40_s28  ;;  %s63_s30 = int_to_ptr.vmem [resolvable:$true] %s62_s30 }
   0x8   :  { %s4380_s14 = scalar_lea.vmem %s41_s28, 128  ;;  %p4385_p1 = scmp.lt.s32.totalorder %s41_s28, %s41_s28 }
   0x9   :  { %p4381_p0 = scmp.ne.s32.totalorder %s41_s28, %s4380_s14  ;;  %p4386_p2 = scmp.lt.s32.totalorder %s4380_s14, %s4380_s14 }
   0xb   :  { %p4387_p3 = por %p4386_p2, %p4385_p1 }
   0xd   :  { %p4388_p4 = pnand %p4387_p3, %p4381_p0 }
   0xf   :  { %4391 = shalt.err (!%p4388_p4)
}
  0x10   :  { %43 = dma.hbm_to_vmem [thread:$0]  %s4743_s1, 128, %s41_s28, [#allocation6]  }
  0x11   :  { %s4400_s16 = scalar_lea.vmem %s63_s30, 256  ;;  %p4405_p6 = scmp.lt.s32.totalorder %s63_s30, %s63_s30 }
  0x12   :  { %p4401_p5 = scmp.ne.s32.totalorder %s63_s30, %s4400_s16  ;;  %p4406_p7 = scmp.lt.s32.totalorder %s4400_s16, %s4400_s16 }
  0x14   :  { %p4407_p8 = por %p4406_p7, %p4405_p6 }
  0x16   :  { %p4408_p9 = pnand %p4407_p8, %p4401_p5 }
  0x18   :  { %4411 = shalt.err (!%p4408_p9)
}
  0x19   :  { %65 = dma.hbm_to_vmem [thread:$0]  %s4745_s3, 256, %s63_s30, [#allocation9]  }
  0x1a   :  { %s4522_s19 = smov [#allocation11]   ;;  %s4523_s21 = smov [#allocation3]  }
  0x1b   :  { %s87_s20 = sshll.u32 %s4522_s19, 4  ;;  %s30_s22 = sshll.u32 %s4523_s21, 4  ;;  %s88_s20 = int_to_ptr.vmem [resolvable:$true] %s87_s20  ;;  %s31_s22 = int_to_ptr.vmem [resolvable:$true] %s30_s22 }
  0x1c   :  { %s4420_s23 = scalar_lea.vmem %s88_s20, 16384  ;;  %p4425_p11 = scmp.lt.s32.totalorder %s88_s20, %s88_s20 }
  0x1d   :  { %p4421_p10 = scmp.ne.s32.totalorder %s88_s20, %s4420_s23  ;;  %p4426_p12 = scmp.lt.s32.totalorder %s4420_s23, %s4420_s23 }
  0x1f   :  { %p4427_p13 = por %p4426_p12, %p4425_p11 }
  0x21   :  { %p4428_p0 = pnand %p4427_p13, %p4421_p10 }
  0x23   :  { %4431 = shalt.err (!%p4428_p0)
}
  0x24   :  { %s4524_s1 = smov 256   ;;  %s4525_s24 = smov 16  }
  0x25   :  { %93 = dma.hbm_to_vmem [thread:$0]  %s4749_s7, 16384, %s88_s20, [#allocation12], %s4524_s1, %s4524_s1, %s4525_s24  }
  0x26   :  { %s4440_s26 = scalar_lea.vmem %s31_s22, 128  ;;  %p4445_p2 = scmp.lt.s32.totalorder %s31_s22, %s31_s22 }
  0x27   :  { %p4441_p1 = scmp.ne.s32.totalorder %s31_s22, %s4440_s26  ;;  %p4446_p3 = scmp.lt.s32.totalorder %s4440_s26, %s4440_s26 }
  0x29   :  { %p4447_p4 = por %p4446_p3, %p4445_p2 }
  0x2b   :  { %p4448_p5 = pnand %p4447_p4, %p4441_p1 }
  0x2d   :  { %4451 = shalt.err (!%p4448_p5)
}
  0x2e   :  { %33 = dma.hbm_to_vmem [thread:$0]  %s4742_s0, 128, %s31_s22, [#allocation4]  }
  0x2f   :  { %s4526_s29 = smov [#allocation7]   ;;  %s4527_s14 = smov [#allocation10]  }
  0x30   :  { %s49_s30 = sshll.u32 %s4526_s29, 4  ;;  %s73_s15 = sshll.u32 %s4527_s14, 4  ;;  %s50_s30 = int_to_ptr.vmem [resolvable:$true] %s49_s30  ;;  %s74_s15 = int_to_ptr.vmem [resolvable:$true] %s73_s15 }
  0x31   :  { %s4460_s12 = scalar_lea.vmem %s50_s30, 768  ;;  %p4465_p7 = scmp.lt.s32.totalorder %s50_s30, %s50_s30 }
  0x32   :  { %p4461_p6 = scmp.ne.s32.totalorder %s50_s30, %s4460_s12  ;;  %p4466_p8 = scmp.lt.s32.totalorder %s4460_s12, %s4460_s12 }
  0x34   :  { %p4467_p9 = por %p4466_p8, %p4465_p7 }
  0x36   :  { %p4468_p10 = pnand %p4467_p9, %p4461_p6 }
  0x38   :  { %4471 = shalt.err (!%p4468_p10)
}
  0x39   :  { %55 = dma.hbm_to_vmem [thread:$0]  %s4744_s2, 768, %s50_s30, [#allocation6], %s4524_s1, %s4524_s1, %s4525_s24  }
  0x3a   :  { %s4480_s0 = scalar_lea.vmem %s74_s15, 16384  ;;  %p4485_p12 = scmp.lt.s32.totalorder %s74_s15, %s74_s15 }
  0x3b   :  { %p4481_p11 = scmp.ne.s32.totalorder %s74_s15, %s4480_s0  ;;  %p4486_p13 = scmp.lt.s32.totalorder %s4480_s0, %s4480_s0 }
  0x3d   :  { %p4487_p0 = por %p4486_p13, %p4485_p12 }
  0x3f   :  { %p4488_p1 = pnand %p4487_p0, %p4481_p11 }
  0x41   :  { %4491 = shalt.err (!%p4488_p1)
}
  0x42   :  { %79 = dma.hbm_to_vmem [thread:$0]  %s4747_s5, 16384, %s74_s15, [#allocation9], %s4524_s1, %s4524_s1, %s4525_s24  }
  0x43   :  { %s4528_s19 = smov [#allocation13]  }
  0x44   :  { %s101_s20 = sshll.u32 %s4528_s19, 4  ;;  %s102_s20 = int_to_ptr.vmem [resolvable:$true] %s101_s20 }
  0x45   :  { %s4500_s21 = scalar_lea.vmem %s102_s20, 16384  ;;  %p4505_p3 = scmp.lt.s32.totalorder %s102_s20, %s102_s20 }
  0x46   :  { %p4501_p2 = scmp.ne.s32.totalorder %s102_s20, %s4500_s21  ;;  %p4506_p4 = scmp.lt.s32.totalorder %s4500_s21, %s4500_s21 }
  0x48   :  { %p4507_p5 = por %p4506_p4, %p4505_p3 }
  0x4a   :  { %p4508_p6 = pnand %p4507_p5, %p4501_p2 }
  0x4c   :  { %4511 = shalt.err (!%p4508_p6)
}
  0x4d   :  { %107 = dma.hbm_to_vmem [thread:$0]  %s4751_s9, 16384, %s102_s20, [#allocation12], %s4524_s1, %s4524_s1, %s4525_s24  }
  0x4e   :  { %4512 = dma.done.wait [#allocation4], 128  }
  0x4f   :  { %4513 = vsyncadd [#allocation4], 4294967168 }
  0x50   :  { %4514 = dma.done.wait [#allocation6], 896  }
  0x51   :  { %4515 = vsyncadd [#allocation6], 4294966400 }
  0x52   :  { %4516 = dma.done.wait [#allocation9], 16640  }
  0x53   :  { %4517 = vsyncadd [#allocation9], 4294950656 }
  0x54   :  { %4518 = dma.done.wait [#allocation12], 32768  }
  0x55   :  { %4519 = vsyncadd [#allocation12], 4294934528  ;;  %v4529_v1 = vmov 0   ;;  %v146_v2 = vld [vmem:[#allocation8] sm:$0xff]  ;;  %vm162_vm0 = vcmask 1043456   ;;  %v147_v3 = vld [vmem:[#allocation8 + $0x8] sm:$0xff] }
  0x56   :  { %207 = vmatprep.mubr.bf16.mxu0 %v4529_v1  ;;  %248 = vmatprep.mubr.bf16.mxu1 %v4529_v1  ;;  %v144_v4 = vld [vmem:[#allocation5] sm:$0xff]  ;;  %v3368_v5 = vcombine.high %v146_v2, %v146_v2  ;;  %v3370_v6 = vcombine.high %v147_v3, %v147_v3  ;;  %v3367_v7 = vcombine.low %v146_v2, %v146_v2  ;;  %v142_v9 = vld [vmem:[#allocation7 + $0x20] sm:$0xff]  ;;  %v143_v10 = vld [vmem:[#allocation7 + $0x28] sm:$0xff]  ;;  %vm158_vm1 = vcmask 64512  }
  0x57   :  { %v3369_v8 = vcombine.low %v147_v3, %v147_v3  ;;  %v3380_v11 = vcombine.high %v142_v9, %v142_v9  ;;  %v3382_v12 = vcombine.high %v143_v10, %v143_v10  ;;  %v3379_v13 = vcombine.low %v142_v9, %v142_v9  ;;  %v3792_v18 = vld [vmem:[#allocation7 + $0x4] ss:$16 sps:$4 sm:$0xff]   ;;  %v3795_v21 = vld [vmem:[#allocation7 + $0xc] ss:$16 sps:$4 sm:$0xff]   ;;  %v3790_v22 = vld [vmem:[#allocation7] ss:$16 sps:$4 sm:$0xff]  }
  0x58   :  { %3371 = vmatprep.subr.msk.bf16.mxu0 %vm162_vm0, %v3368_v5  ;;  %3373 = vmatprep.subr.msk.bf16.mxu1 %vm162_vm0, %v3370_v6  ;;  %v164_v14 = vsel %vm162_vm0, %v3367_v7, 0  ;;  %v145_v16 = vpack.c.bf16 %v144_v4, %v144_v4  ;;  %v3381_v17 = vcombine.low %v143_v10, %v143_v10  ;;  %v3793_v23 = vld [vmem:[#allocation7 + $0x8] ss:$16 sps:$4 sm:$0xff]   ;;  %v136_v24 = vld [vmem:[#allocation3] sm:$0xff]  ;;  %vm287_vm2 = vcmask 195584  }
  0x59   :  { %v170_v15 = vsel %vm162_vm0, %v3369_v8, 0  ;;  %190 = vmatpush1.bf16.msra.mxu0 %v164_v14  ;;  %v292_v19 = vsel %vm162_vm0, %v3379_v13, 0  ;;  %v3798_v25 = vld [vmem:[#allocation10 + $0xe4] ss:$16 sps:$4 sm:$0xff]   ;;  %v137_v27 = vpack.c.bf16 %v136_v24, %v136_v24  ;;  %v3796_v28 = vld [vmem:[#allocation10 + $0xe0] ss:$16 sps:$4 sm:$0xff]  }
  0x5a   :  { %231 = vmatpush1.bf16.msra.mxu1 %v170_v15  ;;  %3383 = vmatprep.subr.msk.bf16.mxu0 %vm162_vm0, %v3380_v11  ;;  %v298_v20 = vsel %vm162_vm0, %v3381_v17, 0  ;;  %v3801_v26 = vld [vmem:[#allocation10 + $0x2e4] ss:$16 sps:$4 sm:$0xff]   ;;  %v3799_v29 = vld [vmem:[#allocation10 + $0x2e0] ss:$16 sps:$4 sm:$0xff]   ;;  %vm3357_vm3 = vcmask 7168  }
  0x5b   :  { %3385 = vmatprep.subr.msk.bf16.mxu1 %vm162_vm0, %v3382_v12  ;;  %v3804_v30 = vld [vmem:[#allocation10 + $0xc4] ss:$16 sps:$4 sm:$0xff]   ;;  %v3802_v32 = vld [vmem:[#allocation10 + $0xc0] ss:$16 sps:$4 sm:$0xff]  }
  0x5c   :  { %3372 = vmatmul.mubr.msk.bf16.vlgmr.msra.gmra.mxu0 %vm158_vm1, %v145_v16  ;;  %v3807_v31 = vld [vmem:[#allocation10 + $0x2c4] ss:$16 sps:$4 sm:$0xff]   ;;  %v3805_v33 = vld [vmem:[#allocation10 + $0x2c0] ss:$16 sps:$4 sm:$0xff]  }
  0x5d   :  { %3374 = vmatmul.mubr.msk.bf16.vlgmr.msra.gmra.mxu1 %vm158_vm1, %v145_v16  ;;  %316 = vmatpush1.bf16.msra.mxu0 %v292_v19  ;;  %v3810_v34 = vld [vmem:[#allocation10 + $0xa4] ss:$16 sps:$4 sm:$0xff]   ;;  %v3808_v36 = vld [vmem:[#allocation10 + $0xa0] ss:$16 sps:$4 sm:$0xff]  }
  0x5e   :  { %357 = vmatpush1.bf16.msra.mxu1 %v298_v20  ;;  %317 = vmatprep.subr.bf16.mxu0 %v3792_v18  ;;  %v3813_v35 = vld [vmem:[#allocation10 + $0x2a4] ss:$16 sps:$4 sm:$0xff]   ;;  %v3811_v37 = vld [vmem:[#allocation10 + $0x2a0] ss:$16 sps:$4 sm:$0xff]  }
  0x5f   :  { %358 = vmatprep.subr.bf16.mxu1 %v3795_v21  ;;  %335 = vmatprep.mubr.bf16.mxu0 %v4529_v1  ;;  %v3816_v38 = vld [vmem:[#allocation10 + $0x84] ss:$16 sps:$4 sm:$0xff]   ;;  %v3814_v40 = vld [vmem:[#allocation10 + $0x80] ss:$16 sps:$4 sm:$0xff]  }
  0x60   :  { %376 = vmatprep.mubr.bf16.mxu1 %v4529_v1  ;;  %v3819_v39 = vld [vmem:[#allocation10 + $0x284] ss:$16 sps:$4 sm:$0xff]   ;;  %v3817_v41 = vld [vmem:[#allocation10 + $0x280] ss:$16 sps:$4 sm:$0xff]  }
  0x61   :  { %318 = vmatpush1.bf16.msra.mxu0 %v3790_v22  ;;  %v3822_v42 = vld [vmem:[#allocation10 + $0x64] ss:$16 sps:$4 sm:$0xff]   ;;  %v3820_v44 = vld [vmem:[#allocation10 + $0x60] ss:$16 sps:$4 sm:$0xff]  }
  0x62   :  { %359 = vmatpush1.bf16.msra.mxu1 %v3793_v23  ;;  %1209 = vmatprep.subr.bf16.mxu0 %v3798_v25  ;;  %v3825_v43 = vld [vmem:[#allocation10 + $0x264] ss:$16 sps:$4 sm:$0xff]   ;;  %v3823_v45 = vld [vmem:[#allocation10 + $0x260] ss:$16 sps:$4 sm:$0xff]  }
  0x63   :  { %1250 = vmatprep.subr.bf16.mxu1 %v3801_v26  ;;  %v3828_v46 = vld [vmem:[#allocation10 + $0x44] ss:$16 sps:$4 sm:$0xff]   ;;  %v3826_v48 = vld [vmem:[#allocation10 + $0x40] ss:$16 sps:$4 sm:$0xff]   ;;  %v3894_v26 = vld [vmem:[#allocation10 + $0xec] ss:$16 sps:$4 sm:$0xff]  }
  0x64   :  { %3384 = vmatmul.mubr.msk.bf16.vlgmr.msra.gmra.mxu0 %vm287_vm2, %v137_v27  ;;  %v3831_v47 = vld [vmem:[#allocation10 + $0x244] ss:$16 sps:$4 sm:$0xff]   ;;  %v3829_v49 = vld [vmem:[#allocation10 + $0x240] ss:$16 sps:$4 sm:$0xff]  }
  0x65   :  { %3386 = vmatmul.mubr.msk.bf16.vlgmr.msra.gmra.mxu1 %vm287_vm2, %v137_v27  ;;  %1210 = vmatpush1.bf16.msra.mxu0 %v3796_v28  ;;  %v3834_v50 = vld [vmem:[#allocation10 + $0x24] ss:$16 sps:$4 sm:$0xff]   ;;  %v3832_v52 = vld [vmem:[#allocation10 + $0x20] ss:$16 sps:$4 sm:$0xff]   ;;  %v3897_v27 = vld [vmem:[#allocation10 + $0x2ec] ss:$16 sps:$4 sm:$0xff]   ;;  %v387_v28 = vlaneseq }
  0x66   :  { %1251 = vmatpush1.bf16.msra.mxu1 %v3799_v29  ;;  %1211 = vmatprep.subr.bf16.mxu0 %v3804_v30  ;;  %v3837_v51 = vld [vmem:[#allocation10 + $0x224] ss:$16 sps:$4 sm:$0xff]   ;;  %v3835_v53 = vld [vmem:[#allocation10 + $0x220] ss:$16 sps:$4 sm:$0xff]  }
  0x67   :  { %1252 = vmatprep.subr.bf16.mxu1 %v3807_v31  ;;  %v3840_v54 = vld [vmem:[#allocation10 + $0x4] ss:$16 sps:$4 sm:$0xff]   ;;  %v3838_v56 = vld [vmem:[#allocation10] ss:$16 sps:$4 sm:$0xff]   ;;  %v4644_v29 = vshrl.u32 %v387_v28, 7 }
  0x68   :  { %v3843_v55 = vld [vmem:[#allocation10 + $0x204] ss:$16 sps:$4 sm:$0xff]   ;;  %v3841_v57 = vld [vmem:[#allocation10 + $0x200] ss:$16 sps:$4 sm:$0xff]   ;;  %v3925_v28 = vld [vmem:[#allocation10 + $0x248] ss:$16 sps:$4 sm:$0xff]  }
  0x69   :  { %1212 = vmatpush1.bf16.msra.mxu0 %v3802_v32  ;;  %v3846_v58 = vld [vmem:[#allocation10 + $0x1e4] ss:$16 sps:$4 sm:$0xff]   ;;  %v3844_v60 = vld [vmem:[#allocation10 + $0x1e0] ss:$16 sps:$4 sm:$0xff]  }
  0x6a   :  { %1253 = vmatpush1.bf16.msra.mxu1 %v3805_v33  ;;  %1213 = vmatprep.subr.bf16.mxu0 %v3810_v34  ;;  %v3849_v59 = vld [vmem:[#allocation10 + $0x3e4] ss:$16 sps:$4 sm:$0xff]   ;;  %v3847_v61 = vld [vmem:[#allocation10 + $0x3e0] ss:$16 sps:$4 sm:$0xff]   ;;  %v4647_v34 = vsub.s32 0, %v4644_v29 }
  0x6b   :  { %1254 = vmatprep.subr.bf16.mxu1 %v3813_v35  ;;  %v3852_v62 = vld [vmem:[#allocation10 + $0x1c4] ss:$16 sps:$4 sm:$0xff]   ;;  %v3850_v0 = vld [vmem:[#allocation10 + $0x1c0] ss:$16 sps:$4 sm:$0xff]   ;;  %v4650_v35 = vsub.s32 2, %v4644_v29 }
  0x6c   :  { %v3855_v63 = vld [vmem:[#allocation10 + $0x3c4] ss:$16 sps:$4 sm:$0xff]   ;;  %v3853_v1 = vld [vmem:[#allocation10 + $0x3c0] ss:$16 sps:$4 sm:$0xff]  }
  0x6d   :  { %1214 = vmatpush1.bf16.msra.mxu0 %v3808_v36  ;;  %v3858_v2 = vld [vmem:[#allocation10 + $0x1a4] ss:$16 sps:$4 sm:$0xff]   ;;  %v3856_v4 = vld [vmem:[#allocation10 + $0x1a0] ss:$16 sps:$4 sm:$0xff]  }
  0x6e   :  { %1255 = vmatpush1.bf16.msra.mxu1 %v3811_v37  ;;  %1215 = vmatprep.subr.bf16.mxu0 %v3816_v38  ;;  %v3861_v3 = vld [vmem:[#allocation10 + $0x3a4] ss:$16 sps:$4 sm:$0xff]   ;;  %v3859_v5 = vld [vmem:[#allocation10 + $0x3a0] ss:$16 sps:$4 sm:$0xff]  }
  0x6f   :  { %1256 = vmatprep.subr.bf16.mxu1 %v3819_v39  ;;  %v3864_v6 = vld [vmem:[#allocation10 + $0x184] ss:$16 sps:$4 sm:$0xff]   ;;  %v3862_v8 = vld [vmem:[#allocation10 + $0x180] ss:$16 sps:$4 sm:$0xff]   ;;  %v4656_v39 = vsub.s32 1, %v4644_v29 }
  0x70   :  { %v3867_v7 = vld [vmem:[#allocation10 + $0x384] ss:$16 sps:$4 sm:$0xff]   ;;  %v3865_v9 = vld [vmem:[#allocation10 + $0x380] ss:$16 sps:$4 sm:$0xff]  }
  0x71   :  { %1216 = vmatpush1.bf16.msra.mxu0 %v3814_v40  ;;  %v3870_v10 = vld [vmem:[#allocation10 + $0x164] ss:$16 sps:$4 sm:$0xff]   ;;  %v3868_v12 = vld [vmem:[#allocation10 + $0x160] ss:$16 sps:$4 sm:$0xff]   ;;  %v4659_v40 = vsub.s32 3, %v4644_v29 }
  0x72   :  { %1257 = vmatpush1.bf16.msra.mxu1 %v3817_v41  ;;  %1217 = vmatprep.subr.bf16.mxu0 %v3822_v42  ;;  %v3873_v11 = vld [vmem:[#allocation10 + $0x364] ss:$16 sps:$4 sm:$0xff]   ;;  %v3871_v13 = vld [vmem:[#allocation10 + $0x360] ss:$16 sps:$4 sm:$0xff]  }
  0x73   :  { %1258 = vmatprep.subr.bf16.mxu1 %v3825_v43  ;;  %v3876_v14 = vld [vmem:[#allocation10 + $0x144] ss:$16 sps:$4 sm:$0xff]   ;;  %v3874_v16 = vld [vmem:[#allocation10 + $0x140] ss:$16 sps:$4 sm:$0xff]  }
  0x74   :  { %v3879_v15 = vld [vmem:[#allocation10 + $0x344] ss:$16 sps:$4 sm:$0xff]   ;;  %v3877_v17 = vld [vmem:[#allocation10 + $0x340] ss:$16 sps:$4 sm:$0xff]  }
  0x75   :  { %1218 = vmatpush1.bf16.msra.mxu0 %v3820_v44  ;;  %v3882_v18 = vld [vmem:[#allocation10 + $0x124] ss:$16 sps:$4 sm:$0xff]   ;;  %v3880_v20 = vld [vmem:[#allocation10 + $0x120] ss:$16 sps:$4 sm:$0xff]  }
  0x76   :  { %1259 = vmatpush1.bf16.msra.mxu1 %v3823_v45  ;;  %1219 = vmatprep.subr.bf16.mxu0 %v3828_v46  ;;  %v3885_v19 = vld [vmem:[#allocation10 + $0x324] ss:$16 sps:$4 sm:$0xff]   ;;  %v3883_v21 = vld [vmem:[#allocation10 + $0x320] ss:$16 sps:$4 sm:$0xff]  }
  0x77   :  { %1260 = vmatprep.subr.bf16.mxu1 %v3831_v47  ;;  %v3888_v22 = vld [vmem:[#allocation10 + $0x104] ss:$16 sps:$4 sm:$0xff]   ;;  %v3886_v24 = vld [vmem:[#allocation10 + $0x100] ss:$16 sps:$4 sm:$0xff]  }
  0x78   :  { %v3891_v23 = vld [vmem:[#allocation10 + $0x304] ss:$16 sps:$4 sm:$0xff]   ;;  %v3889_v25 = vld [vmem:[#allocation10 + $0x300] ss:$16 sps:$4 sm:$0xff]  }
  0x79   :  { %1220 = vmatpush1.bf16.msra.mxu0 %v3826_v48  ;;  %v385_v38 = vld [vmem:[%s4746_s4] sm:$0xf] }
  0x7a   :  { %1261 = vmatpush1.bf16.msra.mxu1 %v3829_v49  ;;  %1221 = vmatprep.subr.bf16.mxu0 %v3834_v50  ;;  %v390_v43 = vrot.slane %v385_v38, %v4647_v34  ;;  %v398_v44 = vrot.slane %v385_v38, %v4650_v35  ;;  %v394_v49 = vrot.slane %v385_v38, %v4656_v39 }
  0x7b   :  { %1262 = vmatprep.subr.bf16.mxu1 %v3837_v51  ;;  %v402_v50 = vrot.slane %v385_v38, %v4659_v40  ;;  %v3934_v38 = vld [vmem:[#allocation10 + $0x8] ss:$16 sps:$4 sm:$0xff]  }
  0x7d   :  { %1222 = vmatpush1.bf16.msra.mxu0 %v3832_v52 }
  0x7e   :  { %1263 = vmatpush1.bf16.msra.mxu1 %v3835_v53  ;;  %1223 = vmatprep.subr.bf16.mxu0 %v3840_v54 }
  0x7f   :  { %1264 = vmatprep.subr.bf16.mxu1 %v3843_v55 }
  0x81   :  { %1224 = vmatpush1.bf16.msra.mxu0 %v3838_v56 }
  0x82   :  { %1265 = vmatpush1.bf16.msra.mxu1 %v3841_v57  ;;  %1225 = vmatprep.subr.bf16.mxu0 %v3846_v58 }
  0x83   :  { %1266 = vmatprep.subr.bf16.mxu1 %v3849_v59 }
  0x85   :  { %1226 = vmatpush2.bf16.msra.mxu0 %v3844_v60 }
  0x86   :  { %1267 = vmatpush2.bf16.msra.mxu1 %v3847_v61  ;;  %1227 = vmatprep.subr.bf16.mxu0 %v3852_v62 }
  0x87   :  { %1268 = vmatprep.subr.bf16.mxu1 %v3855_v63 }
  0x89   :  { %1228 = vmatpush2.bf16.msra.mxu0 %v3850_v0 }
  0x8a   :  { %1269 = vmatpush2.bf16.msra.mxu1 %v3853_v1  ;;  %1229 = vmatprep.subr.bf16.mxu0 %v3858_v2 }
  0x8b   :  { %1270 = vmatprep.subr.bf16.mxu1 %v3861_v3 }
  0x8d   :  { %1230 = vmatpush2.bf16.msra.mxu0 %v3856_v4 }
  0x8e   :  { %1271 = vmatpush2.bf16.msra.mxu1 %v3859_v5  ;;  %1231 = vmatprep.subr.bf16.mxu0 %v3864_v6  ;;  %v3892_v5 = vld [vmem:[#allocation10 + $0xe8] ss:$16 sps:$4 sm:$0xff]  }
  0x8f   :  { %1272 = vmatprep.subr.bf16.mxu1 %v3867_v7  ;;  %v3895_v6 = vld [vmem:[#allocation10 + $0x2e8] ss:$16 sps:$4 sm:$0xff]  }
  0x91   :  { %1232 = vmatpush2.bf16.msra.mxu0 %v3862_v8 }
  0x92   :  { %1273 = vmatpush2.bf16.msra.mxu1 %v3865_v9  ;;  %1233 = vmatprep.subr.bf16.mxu0 %v3870_v10  ;;  %v3900_v9 = vld [vmem:[#allocation10 + $0xcc] ss:$16 sps:$4 sm:$0xff]  }
  0x93   :  { %1274 = vmatprep.subr.bf16.mxu1 %v3873_v11  ;;  %v3903_v10 = vld [vmem:[#allocation10 + $0x2cc] ss:$16 sps:$4 sm:$0xff]   ;;  %v3898_v11 = vld [vmem:[#allocation10 + $0xc8] ss:$16 sps:$4 sm:$0xff]  }
  0x95   :  { %1234 = vmatpush2.bf16.msra.mxu0 %v3868_v12  ;;  %v3901_v12 = vld [vmem:[#allocation10 + $0x2c8] ss:$16 sps:$4 sm:$0xff]  }
  0x96   :  { %1275 = vmatpush2.bf16.msra.mxu1 %v3871_v13  ;;  %1235 = vmatprep.subr.bf16.mxu0 %v3876_v14  ;;  %v3906_v13 = vld [vmem:[#allocation10 + $0xac] ss:$16 sps:$4 sm:$0xff]  }
  0x97   :  { %1276 = vmatprep.subr.bf16.mxu1 %v3879_v15  ;;  %v3909_v14 = vld [vmem:[#allocation10 + $0x2ac] ss:$16 sps:$4 sm:$0xff]   ;;  %v3904_v15 = vld [vmem:[#allocation10 + $0xa8] ss:$16 sps:$4 sm:$0xff]  }
  0x99   :  { %1236 = vmatpush2.bf16.msra.mxu0 %v3874_v16  ;;  %v3907_v16 = vld [vmem:[#allocation10 + $0x2a8] ss:$16 sps:$4 sm:$0xff]  }
  0x9a   :  { %1277 = vmatpush2.bf16.msra.mxu1 %v3877_v17  ;;  %1237 = vmatprep.subr.bf16.mxu0 %v3882_v18  ;;  %v3912_v17 = vld [vmem:[#allocation10 + $0x8c] ss:$16 sps:$4 sm:$0xff]  }
  0x9b   :  { %1278 = vmatprep.subr.bf16.mxu1 %v3885_v19  ;;  %v3915_v18 = vld [vmem:[#allocation10 + $0x28c] ss:$16 sps:$4 sm:$0xff]   ;;  %v3910_v19 = vld [vmem:[#allocation10 + $0x88] ss:$16 sps:$4 sm:$0xff]  }
  0x9d   :  { %1238 = vmatpush2.bf16.msra.mxu0 %v3880_v20  ;;  %v3913_v20 = vld [vmem:[#allocation10 + $0x288] ss:$16 sps:$4 sm:$0xff]  }
  0x9e   :  { %1279 = vmatpush2.bf16.msra.mxu1 %v3883_v21  ;;  %1239 = vmatprep.subr.bf16.mxu0 %v3888_v22  ;;  %v3918_v21 = vld [vmem:[#allocation10 + $0x6c] ss:$16 sps:$4 sm:$0xff]  }
  0x9f   :  { %1280 = vmatprep.subr.bf16.mxu1 %v3891_v23  ;;  %v3921_v22 = vld [vmem:[#allocation10 + $0x26c] ss:$16 sps:$4 sm:$0xff]   ;;  %v3916_v23 = vld [vmem:[#allocation10 + $0x68] ss:$16 sps:$4 sm:$0xff]  }
  0xa1   :  { %1240 = vmatpush2.bf16.msra.mxu0 %v3886_v24  ;;  %v3919_v24 = vld [vmem:[#allocation10 + $0x268] ss:$16 sps:$4 sm:$0xff]  }
  0xa2   :  { %1281 = vmatpush2.bf16.msra.mxu1 %v3889_v25  ;;  %1291 = vmatprep.subr.bf16.mxu0 %v3894_v26  ;;  %v3924_v25 = vld [vmem:[#allocation10 + $0x4c] ss:$16 sps:$4 sm:$0xff]  }
  0xa3   :  { %1332 = vmatprep.subr.bf16.mxu1 %v3897_v27  ;;  %v3927_v26 = vld [vmem:[#allocation10 + $0x24c] ss:$16 sps:$4 sm:$0xff]   ;;  %v3922_v27 = vld [vmem:[#allocation10 + $0x48] ss:$16 sps:$4 sm:$0xff]  }
 0x11c   :  { %v209_v30 = vpop.f32.mrf.mxu0 }
 0x11d   :  { %v250_v31 = vpop.f32.mrf.mxu1 }
 0x11e   :  { %v211_v32 = vpop.f32.mrf.mxu0 }
 0x11f   :  { %v252_v33 = vpop.f32.mrf.mxu1 }
 0x120   :  { %v213_v36 = vpop.f32.mrf.mxu0 }
 0x121   :  { %v254_v37 = vpop.f32.mrf.mxu1  ;;  %v3936_v36 = vld [vmem:[#allocation10 + $0xc] ss:$16 sps:$4 sm:$0xff]  }
 0x122   :  { %v214_v41 = vpop.f32.mrf.mxu0  ;;  %v3939_v37 = vld [vmem:[#allocation10 + $0x20c] ss:$16 sps:$4 sm:$0xff]  }
 0x123   :  { %v255_v42 = vpop.f32.mrf.mxu1  ;;  %v3937_v41 = vld [vmem:[#allocation10 + $0x208] ss:$16 sps:$4 sm:$0xff]  }
 0x124   :  { %v337_v45 = vpop.f32.mrf.mxu0  ;;  %v3942_v42 = vld [vmem:[#allocation10 + $0x1ec] ss:$16 sps:$4 sm:$0xff]  }
 0x125   :  { %v378_v46 = vpop.f32.mrf.mxu1  ;;  %v338_v47 = vadd.f32 %v337_v45, %v209_v30  ;;  %v3930_v30 = vld [vmem:[#allocation10 + $0x2c] ss:$16 sps:$4 sm:$0xff]   ;;  %v3943_v45 = vld [vmem:[#allocation10 + $0x3e8] ss:$16 sps:$4 sm:$0xff]  }
 0x126   :  { %v379_v48 = vadd.f32 %v378_v46, %v250_v31  ;;  %v339_v51 = vpop.f32.mrf.mxu0  ;;  %v3933_v31 = vld [vmem:[#allocation10 + $0x22c] ss:$16 sps:$4 sm:$0xff]  }
 0x127   :  { %v380_v52 = vpop.f32.mrf.mxu1  ;;  %v407_v53 = vadd.f32 %v390_v43, %v338_v47  ;;  %v340_v55 = vadd.f32 %v339_v51, %v211_v32  ;;  %v3928_v32 = vld [vmem:[#allocation10 + $0x28] ss:$16 sps:$4 sm:$0xff]   ;;  %v3945_v43 = vld [vmem:[#allocation10 + $0x3ec] ss:$16 sps:$4 sm:$0xff]  }
 0x128   :  { %v409_v54 = vadd.f32 %v398_v44, %v379_v48  ;;  %v381_v56 = vadd.f32 %v380_v52, %v252_v33  ;;  %v341_v57 = vpop.f32.mrf.mxu0  ;;  %v3931_v33 = vld [vmem:[#allocation10 + $0x228] ss:$16 sps:$4 sm:$0xff]   ;;  %v3948_v46 = vld [vmem:[#allocation10 + $0x1cc] ss:$16 sps:$4 sm:$0xff]  }
 0x129   :  { %v382_v58 = vpop.f32.mrf.mxu1  ;;  %v408_v59 = vadd.f32 %v394_v49, %v340_v55  ;;  %v411_v61 = vmax.f32 %v407_v53, 0.0  ;;  %v3940_v44 = vld [vmem:[#allocation10 + $0x1e8] ss:$16 sps:$4 sm:$0xff]   ;;  %v3951_v47 = vld [vmem:[#allocation10 + $0x3cc] ss:$16 sps:$4 sm:$0xff]  }
 0x12a   :  { %v410_v60 = vadd.f32 %v402_v50, %v381_v56  ;;  %v413_v62 = vmax.f32 %v409_v54, 0.0  ;;  %v342_v63 = vpop.f32.mrf.mxu0  ;;  %v3946_v48 = vld [vmem:[#allocation10 + $0x1c8] ss:$16 sps:$4 sm:$0xff]   ;;  %v3954_v50 = vld [vmem:[#allocation10 + $0x1ac] ss:$16 sps:$4 sm:$0xff]  }
 0x12b   :  { %v383_v0 = vpop.f32.mrf.mxu1  ;;  %v412_v1 = vmax.f32 %v408_v59, 0.0  ;;  %v4665_v7 = vpack.c.bf16 %v411_v61, %v411_v61  ;;  %v3949_v49 = vld [vmem:[#allocation10 + $0x3c8] ss:$16 sps:$4 sm:$0xff]   ;;  %v3957_v51 = vld [vmem:[#allocation10 + $0x3ac] ss:$16 sps:$4 sm:$0xff]  }
 0x12c   :  { %v414_v2 = vmax.f32 %v410_v60, 0.0  ;;  %v4667_v8 = vpack.c.bf16 %v413_v62, %v413_v62  ;;  %v3952_v52 = vld [vmem:[#allocation10 + $0x1a8] ss:$16 sps:$4 sm:$0xff]   ;;  %v3960_v54 = vld [vmem:[#allocation10 + $0x18c] ss:$16 sps:$4 sm:$0xff]  }
 0x12d   :  { %v416_v3 = vpack.c.bf16 %v412_v1, %v412_v1  ;;  %v3955_v53 = vld [vmem:[#allocation10 + $0x3a8] ss:$16 sps:$4 sm:$0xff]   ;;  %v3963_v55 = vld [vmem:[#allocation10 + $0x38c] ss:$16 sps:$4 sm:$0xff]  }
 0x12e   :  { %v418_v4 = vpack.c.bf16 %v414_v2, %v414_v2  ;;  %v3958_v56 = vld [vmem:[#allocation10 + $0x188] ss:$16 sps:$4 sm:$0xff]   ;;  %v3966_v58 = vld [vmem:[#allocation10 + $0x16c] ss:$16 sps:$4 sm:$0xff]  }
 0x12f   :  { %1241 = vmatprep.mubr.bf16.mxu0 %v416_v3  ;;  %v3961_v57 = vld [vmem:[#allocation10 + $0x388] ss:$16 sps:$4 sm:$0xff]   ;;  %v3969_v59 = vld [vmem:[#allocation10 + $0x36c] ss:$16 sps:$4 sm:$0xff]  }
 0x130   :  { %1282 = vmatprep.mubr.bf16.mxu1 %v418_v4  ;;  %1242 = vmatmul.mubr.bf16.vlgmr.msra.gmra.mxu0 %v4665_v7  ;;  %v3964_v60 = vld [vmem:[#allocation10 + $0x168] ss:$16 sps:$4 sm:$0xff]   ;;  %v3972_v62 = vld [vmem:[#allocation10 + $0x14c] ss:$16 sps:$4 sm:$0xff]  }
 0x131   :  { %1283 = vmatmul.mubr.bf16.vlgmr.msra.gmra.mxu1 %v4667_v8  ;;  %1292 = vmatpush1.bf16.msra.mxu0 %v3892_v5  ;;  %v3967_v61 = vld [vmem:[#allocation10 + $0x368] ss:$16 sps:$4 sm:$0xff]   ;;  %v3975_v63 = vld [vmem:[#allocation10 + $0x34c] ss:$16 sps:$4 sm:$0xff]  }
 0x132   :  { %1333 = vmatpush1.bf16.msra.mxu1 %v3895_v6  ;;  %1323 = vmatprep.mubr.bf16.mxu0 %v416_v3  ;;  %v3970_v0 = vld [vmem:[#allocation10 + $0x148] ss:$16 sps:$4 sm:$0xff]   ;;  %v3978_v2 = vld [vmem:[#allocation10 + $0x12c] ss:$16 sps:$4 sm:$0xff]  }
 0x133   :  { %1364 = vmatprep.mubr.bf16.mxu1 %v418_v4  ;;  %1293 = vmatprep.subr.bf16.mxu0 %v3900_v9  ;;  %v3973_v1 = vld [vmem:[#allocation10 + $0x348] ss:$16 sps:$4 sm:$0xff]   ;;  %v3981_v3 = vld [vmem:[#allocation10 + $0x32c] ss:$16 sps:$4 sm:$0xff]  }
 0x134   :  { %1334 = vmatprep.subr.bf16.mxu1 %v3903_v10  ;;  %v3976_v4 = vld [vmem:[#allocation10 + $0x128] ss:$16 sps:$4 sm:$0xff]   ;;  %v3984_v6 = vld [vmem:[#allocation10 + $0x10c] ss:$16 sps:$4 sm:$0xff]  }
 0x135   :  { %1294 = vmatpush1.bf16.msra.mxu0 %v3898_v11  ;;  %v3979_v5 = vld [vmem:[#allocation10 + $0x328] ss:$16 sps:$4 sm:$0xff]   ;;  %v3987_v9 = vld [vmem:[#allocation10 + $0x30c] ss:$16 sps:$4 sm:$0xff]  }
 0x136   :  { %1335 = vmatpush1.bf16.msra.mxu1 %v3901_v12  ;;  %1295 = vmatprep.subr.bf16.mxu0 %v3906_v13  ;;  %v3982_v10 = vld [vmem:[#allocation10 + $0x108] ss:$16 sps:$4 sm:$0xff]   ;;  %v3990_v12 = vld [vmem:[#allocation11 + $0xe4] ss:$16 sps:$4 sm:$0xff]   ;;  %v3988_v13 = vld [vmem:[#allocation11 + $0xe0] ss:$16 sps:$4 sm:$0xff]  }
 0x137   :  { %1336 = vmatprep.subr.bf16.mxu1 %v3909_v14  ;;  %v3985_v11 = vld [vmem:[#allocation10 + $0x308] ss:$16 sps:$4 sm:$0xff]   ;;  %v3993_v14 = vld [vmem:[#allocation11 + $0xc4] ss:$16 sps:$4 sm:$0xff]  }
 0x139   :  { %1296 = vmatpush1.bf16.msra.mxu0 %v3904_v15  ;;  %v3991_v15 = vld [vmem:[#allocation11 + $0xc0] ss:$16 sps:$4 sm:$0xff]  }
 0x13a   :  { %1337 = vmatpush1.bf16.msra.mxu1 %v3907_v16  ;;  %1297 = vmatprep.subr.bf16.mxu0 %v3912_v17  ;;  %v3996_v16 = vld [vmem:[#allocation11 + $0xa4] ss:$16 sps:$4 sm:$0xff]   ;;  %v3994_v17 = vld [vmem:[#allocation11 + $0xa0] ss:$16 sps:$4 sm:$0xff]  }
 0x13b   :  { %1338 = vmatprep.subr.bf16.mxu1 %v3915_v18  ;;  %v3999_v18 = vld [vmem:[#allocation11 + $0x84] ss:$16 sps:$4 sm:$0xff]  }
 0x13d   :  { %1298 = vmatpush1.bf16.msra.mxu0 %v3910_v19  ;;  %v3997_v19 = vld [vmem:[#allocation11 + $0x80] ss:$16 sps:$4 sm:$0xff]  }
 0x13e   :  { %1339 = vmatpush1.bf16.msra.mxu1 %v3913_v20  ;;  %1299 = vmatprep.subr.bf16.mxu0 %v3918_v21  ;;  %v4036_v20 = vld [vmem:[#allocation11 + $0x2e0] ss:$16 sps:$4 sm:$0xff]   ;;  %v4038_v21 = vld [vmem:[#allocation11 + $0x2e4] ss:$16 sps:$4 sm:$0xff]  }
 0x13f   :  { %1340 = vmatprep.subr.bf16.mxu1 %v3921_v22  ;;  %v4002_v22 = vld [vmem:[#allocation11 + $0x64] ss:$16 sps:$4 sm:$0xff]  }
 0x141   :  { %1300 = vmatpush1.bf16.msra.mxu0 %v3916_v23  ;;  %v4042_v23 = vld [vmem:[#allocation11 + $0x2c0] ss:$16 sps:$4 sm:$0xff]  }
 0x142   :  { %1341 = vmatpush1.bf16.msra.mxu1 %v3919_v24  ;;  %1301 = vmatprep.subr.bf16.mxu0 %v3924_v25  ;;  %v4005_v24 = vld [vmem:[#allocation11 + $0x44] ss:$16 sps:$4 sm:$0xff]   ;;  %v4003_v25 = vld [vmem:[#allocation11 + $0x40] ss:$16 sps:$4 sm:$0xff]  }
 0x143   :  { %1342 = vmatprep.subr.bf16.mxu1 %v3927_v26  ;;  %v4048_v26 = vld [vmem:[#allocation11 + $0x2a0] ss:$16 sps:$4 sm:$0xff]  }
 0x145   :  { %1302 = vmatpush1.bf16.msra.mxu0 %v3922_v27  ;;  %v4050_v27 = vld [vmem:[#allocation11 + $0x2a4] ss:$16 sps:$4 sm:$0xff]  }
 0x146   :  { %1343 = vmatpush1.bf16.msra.mxu1 %v3925_v28  ;;  %1303 = vmatprep.subr.bf16.mxu0 %v3930_v30  ;;  %v4008_v28 = vld [vmem:[#allocation11 + $0x24] ss:$16 sps:$4 sm:$0xff]   ;;  %v4006_v30 = vld [vmem:[#allocation11 + $0x20] ss:$16 sps:$4 sm:$0xff]  }
 0x147   :  { %1344 = vmatprep.subr.bf16.mxu1 %v3933_v31  ;;  %v4054_v31 = vld [vmem:[#allocation11 + $0x280] ss:$16 sps:$4 sm:$0xff]  }
 0x149   :  { %1304 = vmatpush1.bf16.msra.mxu0 %v3928_v32  ;;  %v4056_v32 = vld [vmem:[#allocation11 + $0x284] ss:$16 sps:$4 sm:$0xff]  }
 0x14a   :  { %1345 = vmatpush1.bf16.msra.mxu1 %v3931_v33  ;;  %1305 = vmatprep.subr.bf16.mxu0 %v3936_v36  ;;  %v4011_v33 = vld [vmem:[#allocation11 + $0x4] ss:$16 sps:$4 sm:$0xff]   ;;  %v4009_v36 = vld [vmem:[#allocation11] ss:$16 sps:$4 sm:$0xff]  }
 0x14b   :  { %1346 = vmatprep.subr.bf16.mxu1 %v3939_v37  ;;  %v4060_v37 = vld [vmem:[#allocation11 + $0x260] ss:$16 sps:$4 sm:$0xff]  }
 0x14d   :  { %1306 = vmatpush1.bf16.msra.mxu0 %v3934_v38  ;;  %v4062_v38 = vld [vmem:[#allocation11 + $0x264] ss:$16 sps:$4 sm:$0xff]  }
 0x14e   :  { %1347 = vmatpush1.bf16.msra.mxu1 %v3937_v41  ;;  %1307 = vmatprep.subr.bf16.mxu0 %v3942_v42  ;;  %v4014_v41 = vld [vmem:[#allocation11 + $0x1e4] ss:$16 sps:$4 sm:$0xff]   ;;  %v4012_v42 = vld [vmem:[#allocation11 + $0x1e0] ss:$16 sps:$4 sm:$0xff]  }
 0x14f   :  { %1348 = vmatprep.subr.bf16.mxu1 %v3945_v43  ;;  %v4066_v43 = vld [vmem:[#allocation11 + $0x240] ss:$16 sps:$4 sm:$0xff]  }
 0x151   :  { %1308 = vmatpush2.bf16.msra.mxu0 %v3940_v44  ;;  %v4068_v44 = vld [vmem:[#allocation11 + $0x244] ss:$16 sps:$4 sm:$0xff]  }
 0x152   :  { %1349 = vmatpush2.bf16.msra.mxu1 %v3943_v45  ;;  %1309 = vmatprep.subr.bf16.mxu0 %v3948_v46  ;;  %v4017_v45 = vld [vmem:[#allocation11 + $0x1c4] ss:$16 sps:$4 sm:$0xff]   ;;  %v4015_v46 = vld [vmem:[#allocation11 + $0x1c0] ss:$16 sps:$4 sm:$0xff]  }
 0x153   :  { %1350 = vmatprep.subr.bf16.mxu1 %v3951_v47  ;;  %v4072_v47 = vld [vmem:[#allocation11 + $0x220] ss:$16 sps:$4 sm:$0xff]  }
 0x155   :  { %1310 = vmatpush2.bf16.msra.mxu0 %v3946_v48  ;;  %v4074_v48 = vld [vmem:[#allocation11 + $0x224] ss:$16 sps:$4 sm:$0xff]  }
 0x156   :  { %1351 = vmatpush2.bf16.msra.mxu1 %v3949_v49  ;;  %1311 = vmatprep.subr.bf16.mxu0 %v3954_v50  ;;  %v4020_v49 = vld [vmem:[#allocation11 + $0x1a4] ss:$16 sps:$4 sm:$0xff]   ;;  %v4018_v50 = vld [vmem:[#allocation11 + $0x1a0] ss:$16 sps:$4 sm:$0xff]  }
 0x157   :  { %1352 = vmatprep.subr.bf16.mxu1 %v3957_v51  ;;  %v4078_v51 = vld [vmem:[#allocation11 + $0x200] ss:$16 sps:$4 sm:$0xff]  }
 0x159   :  { %1312 = vmatpush2.bf16.msra.mxu0 %v3952_v52  ;;  %v4080_v52 = vld [vmem:[#allocation11 + $0x204] ss:$16 sps:$4 sm:$0xff]  }
 0x15a   :  { %1353 = vmatpush2.bf16.msra.mxu1 %v3955_v53  ;;  %1313 = vmatprep.subr.bf16.mxu0 %v3960_v54  ;;  %v4023_v53 = vld [vmem:[#allocation11 + $0x184] ss:$16 sps:$4 sm:$0xff]   ;;  %v4021_v54 = vld [vmem:[#allocation11 + $0x180] ss:$16 sps:$4 sm:$0xff]  }
 0x15b   :  { %1354 = vmatprep.subr.bf16.mxu1 %v3963_v55  ;;  %v4084_v55 = vld [vmem:[#allocation11 + $0x3e0] ss:$16 sps:$4 sm:$0xff]  }
 0x15d   :  { %1314 = vmatpush2.bf16.msra.mxu0 %v3958_v56  ;;  %v4086_v56 = vld [vmem:[#allocation11 + $0x3e4] ss:$16 sps:$4 sm:$0xff]  }
 0x15e   :  { %1355 = vmatpush2.bf16.msra.mxu1 %v3961_v57  ;;  %1315 = vmatprep.subr.bf16.mxu0 %v3966_v58  ;;  %v4026_v57 = vld [vmem:[#allocation11 + $0x164] ss:$16 sps:$4 sm:$0xff]   ;;  %v4024_v58 = vld [vmem:[#allocation11 + $0x160] ss:$16 sps:$4 sm:$0xff]  }
 0x15f   :  { %1356 = vmatprep.subr.bf16.mxu1 %v3969_v59  ;;  %v4090_v59 = vld [vmem:[#allocation11 + $0x3c0] ss:$16 sps:$4 sm:$0xff]  }
 0x161   :  { %1316 = vmatpush2.bf16.msra.mxu0 %v3964_v60  ;;  %v4092_v60 = vld [vmem:[#allocation11 + $0x3c4] ss:$16 sps:$4 sm:$0xff]  }
 0x162   :  { %1357 = vmatpush2.bf16.msra.mxu1 %v3967_v61  ;;  %1317 = vmatprep.subr.bf16.mxu0 %v3972_v62  ;;  %v4029_v61 = vld [vmem:[#allocation11 + $0x144] ss:$16 sps:$4 sm:$0xff]   ;;  %v4027_v62 = vld [vmem:[#allocation11 + $0x140] ss:$16 sps:$4 sm:$0xff]  }
 0x163   :  { %1358 = vmatprep.subr.bf16.mxu1 %v3975_v63  ;;  %v4096_v63 = vld [vmem:[#allocation11 + $0x3a0] ss:$16 sps:$4 sm:$0xff]  }
 0x165   :  { %1318 = vmatpush2.bf16.msra.mxu0 %v3970_v0  ;;  %v4098_v0 = vld [vmem:[#allocation11 + $0x3a4] ss:$16 sps:$4 sm:$0xff]  }
 0x166   :  { %1359 = vmatpush2.bf16.msra.mxu1 %v3973_v1  ;;  %1319 = vmatprep.subr.bf16.mxu0 %v3978_v2  ;;  %v4032_v1 = vld [vmem:[#allocation11 + $0x124] ss:$16 sps:$4 sm:$0xff]   ;;  %v4030_v2 = vld [vmem:[#allocation11 + $0x120] ss:$16 sps:$4 sm:$0xff]  }
 0x167   :  { %1360 = vmatprep.subr.bf16.mxu1 %v3981_v3  ;;  %v4102_v3 = vld [vmem:[#allocation11 + $0x380] ss:$16 sps:$4 sm:$0xff]  }
 0x169   :  { %1320 = vmatpush2.bf16.msra.mxu0 %v3976_v4  ;;  %v4104_v4 = vld [vmem:[#allocation11 + $0x384] ss:$16 sps:$4 sm:$0xff]  }
 0x16a   :  { %1361 = vmatpush2.bf16.msra.mxu1 %v3979_v5  ;;  %1321 = vmatprep.subr.bf16.mxu0 %v3984_v6  ;;  %v4035_v5 = vld [vmem:[#allocation11 + $0x104] ss:$16 sps:$4 sm:$0xff]   ;;  %v4033_v6 = vld [vmem:[#allocation11 + $0x100] ss:$16 sps:$4 sm:$0xff]  }
 0x16b   :  { %1362 = vmatprep.subr.bf16.mxu1 %v3987_v9  ;;  %v4108_v9 = vld [vmem:[#allocation11 + $0x360] ss:$16 sps:$4 sm:$0xff]  }
 0x16d   :  { %1322 = vmatpush2.bf16.msra.mxu0 %v3982_v10  ;;  %v4110_v10 = vld [vmem:[#allocation11 + $0x364] ss:$16 sps:$4 sm:$0xff]  }
 0x16e   :  { %1363 = vmatpush2.bf16.msra.mxu1 %v3985_v11  ;;  %2171 = vmatprep.subr.bf16.mxu0 %v3990_v12  ;;  %v4041_v11 = vld [vmem:[#allocation11 + $0xec] ss:$16 sps:$4 sm:$0xff]   ;;  %v4114_v12 = vld [vmem:[#allocation11 + $0x340] ss:$16 sps:$4 sm:$0xff]  }
 0x16f   :  { %2212 = vmatprep.subr.bf16.mxu1 %v4038_v21 }
 0x170   :  { %1324 = vmatmul.mubr.bf16.vlgmr.msra.gmra.mxu0 %v4665_v7  ;;  %v4000_v7 = vld [vmem:[#allocation11 + $0x60] ss:$16 sps:$4 sm:$0xff]  }
 0x171   :  { %1365 = vmatmul.mubr.bf16.vlgmr.msra.gmra.mxu1 %v4667_v8  ;;  %2172 = vmatpush1.bf16.msra.mxu0 %v3988_v13  ;;  %v4044_v8 = vld [vmem:[#allocation11 + $0x2c4] ss:$16 sps:$4 sm:$0xff]  }
 0x172   :  { %2173 = vmatprep.subr.bf16.mxu0 %v3993_v14  ;;  %2213 = vmatpush1.bf16.msra.mxu1 %v4036_v20  ;;  %v4116_v13 = vld [vmem:[#allocation11 + $0x344] ss:$16 sps:$4 sm:$0xff]  }
 0x173   :  { %2214 = vmatprep.subr.bf16.mxu1 %v4044_v8  ;;  %v4122_v14 = vld [vmem:[#allocation11 + $0x324] ss:$16 sps:$4 sm:$0xff]  }
 0x175   :  { %2174 = vmatpush1.bf16.msra.mxu0 %v3991_v15  ;;  %v4120_v15 = vld [vmem:[#allocation11 + $0x320] ss:$16 sps:$4 sm:$0xff]  }
 0x176   :  { %2175 = vmatprep.subr.bf16.mxu0 %v3996_v16  ;;  %2215 = vmatpush1.bf16.msra.mxu1 %v4042_v23  ;;  %v4128_v16 = vld [vmem:[#allocation11 + $0x304] ss:$16 sps:$4 sm:$0xff]  }
 0x177   :  { %2216 = vmatprep.subr.bf16.mxu1 %v4050_v27 }
 0x179   :  { %2176 = vmatpush1.bf16.msra.mxu0 %v3994_v17  ;;  %v4126_v17 = vld [vmem:[#allocation11 + $0x300] ss:$16 sps:$4 sm:$0xff]  }
 0x17a   :  { %2177 = vmatprep.subr.bf16.mxu0 %v3999_v18  ;;  %2217 = vmatpush1.bf16.msra.mxu1 %v4048_v26  ;;  %v4134_v18 = vld [vmem:[#allocation11 + $0x2ec] ss:$16 sps:$4 sm:$0xff]  }
 0x17b   :  { %2218 = vmatprep.subr.bf16.mxu1 %v4056_v32 }
 0x17d   :  { %2178 = vmatpush1.bf16.msra.mxu0 %v3997_v19  ;;  %v4676_v19 = vld [vmem:[%s4748_s6] sm:$0xf] }
 0x17e   :  { %2179 = vmatprep.subr.bf16.mxu0 %v4002_v22  ;;  %2219 = vmatpush1.bf16.msra.mxu1 %v4054_v31  ;;  %v552_v20 = vrot.slane %v4676_v19, %v4647_v34  ;;  %v556_v21 = vrot.slane %v4676_v19, %v4656_v39 }
 0x17f   :  { %2220 = vmatprep.subr.bf16.mxu1 %v4062_v38  ;;  %v4039_v38 = vld [vmem:[#allocation11 + $0xe8] ss:$16 sps:$4 sm:$0xff]  }
 0x181   :  { %2180 = vmatpush1.bf16.msra.mxu0 %v4000_v7 }
 0x182   :  { %2181 = vmatprep.subr.bf16.mxu0 %v4005_v24  ;;  %2221 = vmatpush1.bf16.msra.mxu1 %v4060_v37 }
 0x183   :  { %2222 = vmatprep.subr.bf16.mxu1 %v4068_v44  ;;  %v4053_v44 = vld [vmem:[#allocation11 + $0xac] ss:$16 sps:$4 sm:$0xff]  }
 0x185   :  { %2182 = vmatpush1.bf16.msra.mxu0 %v4003_v25 }
 0x186   :  { %2183 = vmatprep.subr.bf16.mxu0 %v4008_v28  ;;  %2223 = vmatpush1.bf16.msra.mxu1 %v4066_v43  ;;  %v4045_v43 = vld [vmem:[#allocation11 + $0xc8] ss:$16 sps:$4 sm:$0xff]  }
 0x187   :  { %2224 = vmatprep.subr.bf16.mxu1 %v4074_v48  ;;  %v4065_v48 = vld [vmem:[#allocation11 + $0x6c] ss:$16 sps:$4 sm:$0xff]  }
 0x189   :  { %2184 = vmatpush1.bf16.msra.mxu0 %v4006_v30 }
 0x18a   :  { %2185 = vmatprep.subr.bf16.mxu0 %v4011_v33  ;;  %2225 = vmatpush1.bf16.msra.mxu1 %v4072_v47  ;;  %v4057_v47 = vld [vmem:[#allocation11 + $0x88] ss:$16 sps:$4 sm:$0xff]  }
 0x18b   :  { %2226 = vmatprep.subr.bf16.mxu1 %v4080_v52  ;;  %v4077_v52 = vld [vmem:[#allocation11 + $0x2c] ss:$16 sps:$4 sm:$0xff]  }
 0x18d   :  { %2186 = vmatpush1.bf16.msra.mxu0 %v4009_v36 }
 0x18e   :  { %2187 = vmatprep.subr.bf16.mxu0 %v4014_v41  ;;  %2227 = vmatpush1.bf16.msra.mxu1 %v4078_v51  ;;  %v4069_v51 = vld [vmem:[#allocation11 + $0x48] ss:$16 sps:$4 sm:$0xff]  }
 0x18f   :  { %2228 = vmatprep.subr.bf16.mxu1 %v4086_v56  ;;  %v4089_v56 = vld [vmem:[#allocation11 + $0x1ec] ss:$16 sps:$4 sm:$0xff]  }
 0x191   :  { %2188 = vmatpush2.bf16.msra.mxu0 %v4012_v42  ;;  %v4047_v42 = vld [vmem:[#allocation11 + $0xcc] ss:$16 sps:$4 sm:$0xff]  }
 0x192   :  { %2189 = vmatprep.subr.bf16.mxu0 %v4017_v45  ;;  %2229 = vmatpush2.bf16.msra.mxu1 %v4084_v55  ;;  %v4051_v45 = vld [vmem:[#allocation11 + $0xa8] ss:$16 sps:$4 sm:$0xff]  }
 0x193   :  { %2230 = vmatprep.subr.bf16.mxu1 %v4092_v60  ;;  %v4081_v55 = vld [vmem:[#allocation11 + $0x8] ss:$16 sps:$4 sm:$0xff]   ;;  %v4101_v60 = vld [vmem:[#allocation11 + $0x1ac] ss:$16 sps:$4 sm:$0xff]  }
 0x195   :  { %2190 = vmatpush2.bf16.msra.mxu0 %v4015_v46  ;;  %v4059_v46 = vld [vmem:[#allocation11 + $0x8c] ss:$16 sps:$4 sm:$0xff]  }
 0x196   :  { %2191 = vmatprep.subr.bf16.mxu0 %v4020_v49  ;;  %2231 = vmatpush2.bf16.msra.mxu1 %v4090_v59  ;;  %v4063_v49 = vld [vmem:[#allocation11 + $0x68] ss:$16 sps:$4 sm:$0xff]  }
 0x197   :  { %2232 = vmatprep.subr.bf16.mxu1 %v4098_v0  ;;  %v4093_v59 = vld [vmem:[#allocation11 + $0x1c8] ss:$16 sps:$4 sm:$0xff]   ;;  %v4113_v0 = vld [vmem:[#allocation11 + $0x16c] ss:$16 sps:$4 sm:$0xff]  }
 0x199   :  { %2192 = vmatpush2.bf16.msra.mxu0 %v4018_v50  ;;  %v4071_v50 = vld [vmem:[#allocation11 + $0x4c] ss:$16 sps:$4 sm:$0xff]  }
 0x19a   :  { %2193 = vmatprep.subr.bf16.mxu0 %v4023_v53  ;;  %2233 = vmatpush2.bf16.msra.mxu1 %v4096_v63  ;;  %v4075_v53 = vld [vmem:[#allocation11 + $0x28] ss:$16 sps:$4 sm:$0xff]  }
 0x19b   :  { %2234 = vmatprep.subr.bf16.mxu1 %v4104_v4  ;;  %v4105_v63 = vld [vmem:[#allocation11 + $0x188] ss:$16 sps:$4 sm:$0xff]  }
 0x19c   :  { %v4117_v4 = vld [vmem:[#allocation11 + $0x148] ss:$16 sps:$4 sm:$0xff]  }
 0x19d   :  { %2194 = vmatpush2.bf16.msra.mxu0 %v4021_v54  ;;  %v4083_v54 = vld [vmem:[#allocation11 + $0xc] ss:$16 sps:$4 sm:$0xff]  }
 0x19e   :  { %2195 = vmatprep.subr.bf16.mxu0 %v4026_v57  ;;  %2235 = vmatpush2.bf16.msra.mxu1 %v4102_v3  ;;  %v4087_v57 = vld [vmem:[#allocation11 + $0x1e8] ss:$16 sps:$4 sm:$0xff]   ;;  %v560_v3 = vrot.slane %v4676_v19, %v4650_v35 }
 0x19f   :  { %2236 = vmatprep.subr.bf16.mxu1 %v4110_v10 }
 0x1a1   :  { %2196 = vmatpush2.bf16.msra.mxu0 %v4024_v58  ;;  %v4095_v58 = vld [vmem:[#allocation11 + $0x1cc] ss:$16 sps:$4 sm:$0xff]  }
 0x1a2   :  { %2197 = vmatprep.subr.bf16.mxu0 %v4029_v61  ;;  %2237 = vmatpush2.bf16.msra.mxu1 %v4108_v9  ;;  %v4099_v61 = vld [vmem:[#allocation11 + $0x1a8] ss:$16 sps:$4 sm:$0xff]  }
 0x1a3   :  { %2238 = vmatprep.subr.bf16.mxu1 %v4116_v13 }
 0x1a5   :  { %2198 = vmatpush2.bf16.msra.mxu0 %v4027_v62  ;;  %v4107_v62 = vld [vmem:[#allocation11 + $0x18c] ss:$16 sps:$4 sm:$0xff]  }
 0x1a6   :  { %2199 = vmatprep.subr.bf16.mxu0 %v4032_v1  ;;  %2239 = vmatpush2.bf16.msra.mxu1 %v4114_v12  ;;  %v4111_v1 = vld [vmem:[#allocation11 + $0x168] ss:$16 sps:$4 sm:$0xff]  }
 0x1a7   :  { %2240 = vmatprep.subr.bf16.mxu1 %v4122_v14  ;;  %v4123_v12 = vld [vmem:[#allocation11 + $0x128] ss:$16 sps:$4 sm:$0xff]  }
 0x1a9   :  { %2200 = vmatpush2.bf16.msra.mxu0 %v4030_v2  ;;  %v4119_v2 = vld [vmem:[#allocation11 + $0x14c] ss:$16 sps:$4 sm:$0xff]  }
 0x1aa   :  { %2201 = vmatprep.subr.bf16.mxu0 %v4035_v5  ;;  %2241 = vmatpush2.bf16.msra.mxu1 %v4120_v15  ;;  %v4125_v5 = vld [vmem:[#allocation11 + $0x12c] ss:$16 sps:$4 sm:$0xff]  }
 0x1ab   :  { %2242 = vmatprep.subr.bf16.mxu1 %v4128_v16  ;;  %v4131_v15 = vld [vmem:[#allocation11 + $0x10c] ss:$16 sps:$4 sm:$0xff]  }
 0x1ad   :  { %2202 = vmatpush2.bf16.msra.mxu0 %v4033_v6  ;;  %v564_v6 = vrot.slane %v4676_v19, %v4659_v40 }
 0x1ae   :  { %2253 = vmatprep.subr.bf16.mxu0 %v4041_v11  ;;  %2243 = vmatpush2.bf16.msra.mxu1 %v4126_v17 }
 0x1af   :  { %2294 = vmatprep.subr.bf16.mxu1 %v4134_v18 }
 0x1f0   :  { %v1243_v22 = vpop.f32.mrf.mxu0 }
 0x1f1   :  { %v1284_v7 = vpop.f32.mrf.mxu1  ;;  %v1244_v23 = vadd.f32 %v1243_v22, %v552_v20  ;;  %v4129_v22 = vld [vmem:[#allocation11 + $0x108] ss:$16 sps:$4 sm:$0xff]  }
 0x1f2   :  { %v1245_v8 = vpop.f32.mrf.mxu0 }
 0x1f3   :  { %v1286_v24 = vpop.f32.mrf.mxu1  ;;  %v1285_v25 = vadd.f32 %v1284_v7, %v1244_v23  ;;  %v1246_v26 = vadd.f32 %v1245_v8, %v556_v21 }
 0x1f4   :  { %v1247_v27 = vpop.f32.mrf.mxu0 }
 0x1f5   :  { %v1288_v28 = vpop.f32.mrf.mxu1  ;;  %v1287_v30 = vadd.f32 %v1286_v24, %v1246_v26  ;;  %v1373_v31 = vmax.f32 %v1285_v25, 0.0  ;;  %v4132_v25 = vld [vmem:[#allocation11 + $0x2e8] ss:$16 sps:$4 sm:$0xff]   ;;  %v4137_v27 = vld [vmem:[#allocation11 + $0x2cc] ss:$16 sps:$4 sm:$0xff]  }
 0x1f6   :  { %v1248_v32 = vpop.f32.mrf.mxu0  ;;  %v4135_v28 = vld [vmem:[#allocation11 + $0x2c8] ss:$16 sps:$4 sm:$0xff]  }
 0x1f7   :  { %v1289_v33 = vpop.f32.mrf.mxu1  ;;  %v1374_v36 = vmax.f32 %v1287_v30, 0.0  ;;  %v4682_v41 = vpack.c.bf16 %v1373_v31, %v1373_v31  ;;  %v4140_v30 = vld [vmem:[#allocation11 + $0x2ac] ss:$16 sps:$4 sm:$0xff]   ;;  %v4138_v31 = vld [vmem:[#allocation11 + $0x2a8] ss:$16 sps:$4 sm:$0xff]  }
 0x1f8   :  { %v4143_v32 = vld [vmem:[#allocation11 + $0x28c] ss:$16 sps:$4 sm:$0xff]   ;;  %v4180_v33 = vld [vmem:[#allocation13 + $0xe0] ss:$16 sps:$4 sm:$0xff]  }
 0x1f9   :  { %v1378_v37 = vpack.c.bf16 %v1374_v36, %v1374_v36  ;;  %v4182_v36 = vld [vmem:[#allocation13 + $0xe4] ss:$16 sps:$4 sm:$0xff]  }
 0x1fb   :  { %2203 = vmatprep.mubr.bf16.mxu0 %v1378_v37 }
 0x1fc   :  { %2204 = vmatmul.mubr.bf16.vlgmr.msra.gmra.mxu0 %v4682_v41 }
 0x1fd   :  { %2254 = vmatpush1.bf16.msra.mxu0 %v4039_v38  ;;  %2285 = vmatprep.mubr.bf16.mxu0 %v1378_v37  ;;  %v4185_v37 = vld [vmem:[#allocation13 + $0xc4] ss:$16 sps:$4 sm:$0xff]   ;;  %v4141_v38 = vld [vmem:[#allocation11 + $0x288] ss:$16 sps:$4 sm:$0xff]  }
 0x1fe   :  { %2255 = vmatprep.subr.bf16.mxu0 %v4047_v42  ;;  %v4183_v42 = vld [vmem:[#allocation13 + $0xc0] ss:$16 sps:$4 sm:$0xff]  }
 0x201   :  { %2256 = vmatpush1.bf16.msra.mxu0 %v4045_v43  ;;  %v4146_v43 = vld [vmem:[#allocation11 + $0x26c] ss:$16 sps:$4 sm:$0xff]  }
 0x202   :  { %2257 = vmatprep.subr.bf16.mxu0 %v4053_v44  ;;  %v4144_v44 = vld [vmem:[#allocation11 + $0x268] ss:$16 sps:$4 sm:$0xff]  }
 0x205   :  { %2258 = vmatpush1.bf16.msra.mxu0 %v4051_v45  ;;  %v4186_v45 = vld [vmem:[#allocation13 + $0xa0] ss:$16 sps:$4 sm:$0xff]  }
 0x206   :  { %2259 = vmatprep.subr.bf16.mxu0 %v4059_v46  ;;  %v4149_v46 = vld [vmem:[#allocation11 + $0x24c] ss:$16 sps:$4 sm:$0xff]  }
 0x209   :  { %2260 = vmatpush1.bf16.msra.mxu0 %v4057_v47  ;;  %v4191_v47 = vld [vmem:[#allocation13 + $0x84] ss:$16 sps:$4 sm:$0xff]  }
 0x20a   :  { %2261 = vmatprep.subr.bf16.mxu0 %v4065_v48  ;;  %v4147_v48 = vld [vmem:[#allocation11 + $0x248] ss:$16 sps:$4 sm:$0xff]  }
 0x20d   :  { %2262 = vmatpush1.bf16.msra.mxu0 %v4063_v49  ;;  %v4189_v49 = vld [vmem:[#allocation13 + $0x80] ss:$16 sps:$4 sm:$0xff]  }
 0x20e   :  { %2263 = vmatprep.subr.bf16.mxu0 %v4071_v50  ;;  %v4152_v50 = vld [vmem:[#allocation11 + $0x22c] ss:$16 sps:$4 sm:$0xff]  }
 0x211   :  { %2264 = vmatpush1.bf16.msra.mxu0 %v4069_v51  ;;  %v4194_v51 = vld [vmem:[#allocation13 + $0x64] ss:$16 sps:$4 sm:$0xff]  }
 0x212   :  { %2265 = vmatprep.subr.bf16.mxu0 %v4077_v52  ;;  %v4150_v52 = vld [vmem:[#allocation11 + $0x228] ss:$16 sps:$4 sm:$0xff]  }
 0x215   :  { %2266 = vmatpush1.bf16.msra.mxu0 %v4075_v53  ;;  %v4192_v53 = vld [vmem:[#allocation13 + $0x60] ss:$16 sps:$4 sm:$0xff]  }
 0x216   :  { %2267 = vmatprep.subr.bf16.mxu0 %v4083_v54  ;;  %v4155_v54 = vld [vmem:[#allocation11 + $0x20c] ss:$16 sps:$4 sm:$0xff]  }
 0x219   :  { %2268 = vmatpush1.bf16.msra.mxu0 %v4081_v55  ;;  %v4197_v55 = vld [vmem:[#allocation13 + $0x44] ss:$16 sps:$4 sm:$0xff]  }
 0x21a   :  { %2269 = vmatprep.subr.bf16.mxu0 %v4089_v56  ;;  %v4153_v56 = vld [vmem:[#allocation11 + $0x208] ss:$16 sps:$4 sm:$0xff]  }
 0x21d   :  { %2270 = vmatpush2.bf16.msra.mxu0 %v4087_v57  ;;  %v4195_v57 = vld [vmem:[#allocation13 + $0x40] ss:$16 sps:$4 sm:$0xff]  }
 0x21e   :  { %2271 = vmatprep.subr.bf16.mxu0 %v4095_v58  ;;  %v4158_v58 = vld [vmem:[#allocation11 + $0x3ec] ss:$16 sps:$4 sm:$0xff]  }
 0x221   :  { %2272 = vmatpush2.bf16.msra.mxu0 %v4093_v59  ;;  %v4200_v59 = vld [vmem:[#allocation13 + $0x24] ss:$16 sps:$4 sm:$0xff]  }
 0x222   :  { %2273 = vmatprep.subr.bf16.mxu0 %v4101_v60  ;;  %v4156_v60 = vld [vmem:[#allocation11 + $0x3e8] ss:$16 sps:$4 sm:$0xff]  }
 0x225   :  { %2274 = vmatpush2.bf16.msra.mxu0 %v4099_v61  ;;  %v4198_v61 = vld [vmem:[#allocation13 + $0x20] ss:$16 sps:$4 sm:$0xff]  }
 0x226   :  { %2275 = vmatprep.subr.bf16.mxu0 %v4107_v62  ;;  %v4161_v62 = vld [vmem:[#allocation11 + $0x3cc] ss:$16 sps:$4 sm:$0xff]  }
 0x229   :  { %2276 = vmatpush2.bf16.msra.mxu0 %v4105_v63  ;;  %v4203_v63 = vld [vmem:[#allocation13 + $0x4] ss:$16 sps:$4 sm:$0xff]  }
 0x22a   :  { %2277 = vmatprep.subr.bf16.mxu0 %v4113_v0  ;;  %v4159_v0 = vld [vmem:[#allocation11 + $0x3c8] ss:$16 sps:$4 sm:$0xff]  }
 0x22d   :  { %2278 = vmatpush2.bf16.msra.mxu0 %v4111_v1  ;;  %v4201_v1 = vld [vmem:[#allocation13] ss:$16 sps:$4 sm:$0xff]  }
 0x22e   :  { %2279 = vmatprep.subr.bf16.mxu0 %v4119_v2  ;;  %v4164_v2 = vld [vmem:[#allocation11 + $0x3ac] ss:$16 sps:$4 sm:$0xff]  }
 0x230   :  { %v1325_v9 = vpop.f32.mrf.mxu0 }
 0x231   :  { %v1366_v10 = vpop.f32.mrf.mxu1  ;;  %v1326_v11 = vadd.f32 %v1325_v9, %v560_v3  ;;  %2280 = vmatpush2.bf16.msra.mxu0 %v4117_v4  ;;  %v4206_v3 = vld [vmem:[#allocation13 + $0x1e4] ss:$16 sps:$4 sm:$0xff]   ;;  %v4162_v4 = vld [vmem:[#allocation11 + $0x3a8] ss:$16 sps:$4 sm:$0xff]  }
 0x232   :  { %v1327_v13 = vpop.f32.mrf.mxu0  ;;  %2281 = vmatprep.subr.bf16.mxu0 %v4125_v5  ;;  %v4204_v5 = vld [vmem:[#allocation13 + $0x1e0] ss:$16 sps:$4 sm:$0xff]   ;;  %v4209_v9 = vld [vmem:[#allocation13 + $0x1c4] ss:$16 sps:$4 sm:$0xff]  }
 0x233   :  { %v1368_v14 = vpop.f32.mrf.mxu1  ;;  %v1367_v16 = vadd.f32 %v1366_v10, %v1326_v11  ;;  %v1328_v17 = vadd.f32 %v1327_v13, %v564_v6  ;;  %v4167_v6 = vld [vmem:[#allocation11 + $0x38c] ss:$16 sps:$4 sm:$0xff]   ;;  %v4165_v10 = vld [vmem:[#allocation11 + $0x388] ss:$16 sps:$4 sm:$0xff]   ;;  %v4207_v11 = vld [vmem:[#allocation13 + $0x1c0] ss:$16 sps:$4 sm:$0xff]  }
 0x234   :  { %v1329_v18 = vpop.f32.mrf.mxu0  ;;  %v4212_v13 = vld [vmem:[#allocation13 + $0x1a4] ss:$16 sps:$4 sm:$0xff]  }
 0x235   :  { %v1370_v20 = vpop.f32.mrf.mxu1  ;;  %v1369_v21 = vadd.f32 %v1368_v14, %v1328_v17  ;;  %2282 = vmatpush2.bf16.msra.mxu0 %v4123_v12  ;;  %v1375_v7 = vmax.f32 %v1367_v16, 0.0  ;;  %v4170_v12 = vld [vmem:[#allocation11 + $0x36c] ss:$16 sps:$4 sm:$0xff]   ;;  %v4168_v14 = vld [vmem:[#allocation11 + $0x368] ss:$16 sps:$4 sm:$0xff]  }
 0x236   :  { %v1330_v23 = vpop.f32.mrf.mxu0  ;;  %2283 = vmatprep.subr.bf16.mxu0 %v4131_v15  ;;  %v4210_v15 = vld [vmem:[#allocation13 + $0x1a0] ss:$16 sps:$4 sm:$0xff]   ;;  %v4173_v16 = vld [vmem:[#allocation11 + $0x34c] ss:$16 sps:$4 sm:$0xff]   ;;  %v4215_v17 = vld [vmem:[#allocation13 + $0x184] ss:$16 sps:$4 sm:$0xff]  }
 0x237   :  { %v1371_v8 = vpop.f32.mrf.mxu1  ;;  %v1376_v19 = vmax.f32 %v1369_v21, 0.0  ;;  %v4689_v26 = vpack.c.bf16 %v1375_v7, %v1375_v7  ;;  %v4171_v18 = vld [vmem:[#allocation11 + $0x348] ss:$16 sps:$4 sm:$0xff]   ;;  %v4213_v20 = vld [vmem:[#allocation13 + $0x180] ss:$16 sps:$4 sm:$0xff]  }
 0x238   :  { %v4176_v21 = vld [vmem:[#allocation11 + $0x32c] ss:$16 sps:$4 sm:$0xff]   ;;  %v4174_v7 = vld [vmem:[#allocation11 + $0x328] ss:$16 sps:$4 sm:$0xff]   ;;  %v4216_v23 = vld [vmem:[#allocation13 + $0x160] ss:$16 sps:$4 sm:$0xff]  }
 0x239   :  { %v1380_v24 = vpack.c.bf16 %v1376_v19, %v1376_v19  ;;  %2284 = vmatpush2.bf16.msra.mxu0 %v4129_v22  ;;  %v4218_v22 = vld [vmem:[#allocation13 + $0x164] ss:$16 sps:$4 sm:$0xff]   ;;  %v4179_v8 = vld [vmem:[#allocation11 + $0x30c] ss:$16 sps:$4 sm:$0xff]  }
 0x23a   :  { %3133 = vmatprep.subr.bf16.mxu0 %v4182_v36  ;;  %v4221_v19 = vld [vmem:[#allocation13 + $0x144] ss:$16 sps:$4 sm:$0xff]   ;;  %v4233_v36 = vld [vmem:[#allocation13 + $0xec] ss:$16 sps:$4 sm:$0xff]  }
 0x23b   :  { %2244 = vmatprep.mubr.bf16.mxu1 %v1380_v24 }
 0x23c   :  { %2245 = vmatmul.mubr.bf16.vlgmr.msra.gmra.mxu1 %v4689_v26  ;;  %2286 = vmatmul.mubr.bf16.vlgmr.msra.gmra.mxu0 %v4682_v41  ;;  %v4188_v41 = vld [vmem:[#allocation13 + $0xa4] ss:$16 sps:$4 sm:$0xff]  }
 0x23d   :  { %2295 = vmatpush1.bf16.msra.mxu1 %v4132_v25  ;;  %2326 = vmatprep.mubr.bf16.mxu1 %v1380_v24  ;;  %v4177_v24 = vld [vmem:[#allocation11 + $0x308] ss:$16 sps:$4 sm:$0xff]   ;;  %v4219_v25 = vld [vmem:[#allocation13 + $0x140] ss:$16 sps:$4 sm:$0xff]  }
 0x23e   :  { %2296 = vmatprep.subr.bf16.mxu1 %v4137_v27  ;;  %3134 = vmatpush1.bf16.msra.mxu0 %v4180_v33  ;;  %v4224_v27 = vld [vmem:[#allocation13 + $0x124] ss:$16 sps:$4 sm:$0xff]  }
 0x23f   :  { %3135 = vmatprep.subr.bf16.mxu0 %v4185_v37  ;;  %v4230_v33 = vld [vmem:[#allocation13 + $0x2e4] ss:$16 sps:$4 sm:$0xff]   ;;  %v4234_v37 = vld [vmem:[#allocation13 + $0x2c0] ss:$16 sps:$4 sm:$0xff]  }
 0x241   :  { %2297 = vmatpush1.bf16.msra.mxu1 %v4135_v28  ;;  %v4222_v28 = vld [vmem:[#allocation13 + $0x120] ss:$16 sps:$4 sm:$0xff]  }
 0x242   :  { %2298 = vmatprep.subr.bf16.mxu1 %v4140_v30  ;;  %3136 = vmatpush1.bf16.msra.mxu0 %v4183_v42  ;;  %v4227_v30 = vld [vmem:[#allocation13 + $0x104] ss:$16 sps:$4 sm:$0xff]   ;;  %v4240_v42 = vld [vmem:[#allocation13 + $0x2a0] ss:$16 sps:$4 sm:$0xff]  }
 0x243   :  { %3137 = vmatprep.subr.bf16.mxu0 %v4188_v41  ;;  %v4248_v41 = vld [vmem:[#allocation13 + $0x284] ss:$16 sps:$4 sm:$0xff]  }
 0x245   :  { %2299 = vmatpush1.bf16.msra.mxu1 %v4138_v31  ;;  %v4225_v31 = vld [vmem:[#allocation13 + $0x100] ss:$16 sps:$4 sm:$0xff]  }
 0x246   :  { %2300 = vmatprep.subr.bf16.mxu1 %v4143_v32  ;;  %3138 = vmatpush1.bf16.msra.mxu0 %v4186_v45  ;;  %v4228_v32 = vld [vmem:[#allocation13 + $0x2e0] ss:$16 sps:$4 sm:$0xff]   ;;  %v4254_v45 = vld [vmem:[#allocation13 + $0x264] ss:$16 sps:$4 sm:$0xff]  }
 0x247   :  { %3139 = vmatprep.subr.bf16.mxu0 %v4191_v47  ;;  %v4260_v47 = vld [vmem:[#allocation13 + $0x244] ss:$16 sps:$4 sm:$0xff]  }
 0x249   :  { %2301 = vmatpush1.bf16.msra.mxu1 %v4141_v38  ;;  %v4236_v38 = vld [vmem:[#allocation13 + $0x2c4] ss:$16 sps:$4 sm:$0xff]  }
 0x24a   :  { %2302 = vmatprep.subr.bf16.mxu1 %v4146_v43  ;;  %3140 = vmatpush1.bf16.msra.mxu0 %v4189_v49  ;;  %v4246_v43 = vld [vmem:[#allocation13 + $0x280] ss:$16 sps:$4 sm:$0xff]   ;;  %v4266_v49 = vld [vmem:[#allocation13 + $0x224] ss:$16 sps:$4 sm:$0xff]  }
 0x24b   :  { %3141 = vmatprep.subr.bf16.mxu0 %v4194_v51  ;;  %v4272_v51 = vld [vmem:[#allocation13 + $0x204] ss:$16 sps:$4 sm:$0xff]  }
 0x24d   :  { %2303 = vmatpush1.bf16.msra.mxu1 %v4144_v44  ;;  %v4252_v44 = vld [vmem:[#allocation13 + $0x260] ss:$16 sps:$4 sm:$0xff]  }
 0x24e   :  { %2304 = vmatprep.subr.bf16.mxu1 %v4149_v46  ;;  %3142 = vmatpush1.bf16.msra.mxu0 %v4192_v53  ;;  %v4258_v46 = vld [vmem:[#allocation13 + $0x240] ss:$16 sps:$4 sm:$0xff]   ;;  %v4278_v53 = vld [vmem:[#allocation13 + $0x3e4] ss:$16 sps:$4 sm:$0xff]  }
 0x24f   :  { %3143 = vmatprep.subr.bf16.mxu0 %v4197_v55  ;;  %v4284_v55 = vld [vmem:[#allocation13 + $0x3c4] ss:$16 sps:$4 sm:$0xff]  }
 0x251   :  { %2305 = vmatpush1.bf16.msra.mxu1 %v4147_v48  ;;  %v4264_v48 = vld [vmem:[#allocation13 + $0x220] ss:$16 sps:$4 sm:$0xff]  }
 0x252   :  { %2306 = vmatprep.subr.bf16.mxu1 %v4152_v50  ;;  %3144 = vmatpush1.bf16.msra.mxu0 %v4195_v57  ;;  %v4270_v50 = vld [vmem:[#allocation13 + $0x200] ss:$16 sps:$4 sm:$0xff]   ;;  %v4290_v57 = vld [vmem:[#allocation13 + $0x3a4] ss:$16 sps:$4 sm:$0xff]  }
 0x253   :  { %3145 = vmatprep.subr.bf16.mxu0 %v4200_v59  ;;  %v4296_v59 = vld [vmem:[#allocation13 + $0x384] ss:$16 sps:$4 sm:$0xff]  }
 0x255   :  { %2307 = vmatpush1.bf16.msra.mxu1 %v4150_v52  ;;  %v4276_v52 = vld [vmem:[#allocation13 + $0x3e0] ss:$16 sps:$4 sm:$0xff]  }
 0x256   :  { %2308 = vmatprep.subr.bf16.mxu1 %v4155_v54  ;;  %3146 = vmatpush1.bf16.msra.mxu0 %v4198_v61  ;;  %v4282_v54 = vld [vmem:[#allocation13 + $0x3c0] ss:$16 sps:$4 sm:$0xff]   ;;  %v4302_v61 = vld [vmem:[#allocation13 + $0x364] ss:$16 sps:$4 sm:$0xff]  }
 0x257   :  { %3147 = vmatprep.subr.bf16.mxu0 %v4203_v63  ;;  %v4308_v63 = vld [vmem:[#allocation13 + $0x344] ss:$16 sps:$4 sm:$0xff]  }
 0x259   :  { %2309 = vmatpush1.bf16.msra.mxu1 %v4153_v56  ;;  %v4288_v56 = vld [vmem:[#allocation13 + $0x3a0] ss:$16 sps:$4 sm:$0xff]  }
 0x25a   :  { %2310 = vmatprep.subr.bf16.mxu1 %v4158_v58  ;;  %3148 = vmatpush1.bf16.msra.mxu0 %v4201_v1  ;;  %v4294_v58 = vld [vmem:[#allocation13 + $0x380] ss:$16 sps:$4 sm:$0xff]  }
 0x25b   :  { %3149 = vmatprep.subr.bf16.mxu0 %v4206_v3 }
 0x25d   :  { %2311 = vmatpush2.bf16.msra.mxu1 %v4156_v60  ;;  %v4300_v60 = vld [vmem:[#allocation13 + $0x360] ss:$16 sps:$4 sm:$0xff]  }
 0x25e   :  { %2312 = vmatprep.subr.bf16.mxu1 %v4161_v62  ;;  %3150 = vmatpush2.bf16.msra.mxu0 %v4204_v5  ;;  %v4306_v62 = vld [vmem:[#allocation13 + $0x340] ss:$16 sps:$4 sm:$0xff]  }
 0x25f   :  { %3151 = vmatprep.subr.bf16.mxu0 %v4209_v9 }
 0x261   :  { %2313 = vmatpush2.bf16.msra.mxu1 %v4159_v0  ;;  %v4314_v0 = vld [vmem:[#allocation13 + $0x324] ss:$16 sps:$4 sm:$0xff]  }
 0x262   :  { %2314 = vmatprep.subr.bf16.mxu1 %v4164_v2  ;;  %3152 = vmatpush2.bf16.msra.mxu0 %v4207_v11  ;;  %v4312_v2 = vld [vmem:[#allocation13 + $0x320] ss:$16 sps:$4 sm:$0xff]  }
 0x263   :  { %3153 = vmatprep.subr.bf16.mxu0 %v4212_v13  ;;  %v4697_v11 = vld [vmem:[%s4750_s8] sm:$0xf] }
 0x264   :  { %v1518_v13 = vrot.slane %v4697_v11, %v4656_v39 }
 0x265   :  { %2315 = vmatpush2.bf16.msra.mxu1 %v4162_v4  ;;  %v4320_v4 = vld [vmem:[#allocation13 + $0x304] ss:$16 sps:$4 sm:$0xff]  }
 0x266   :  { %2316 = vmatprep.subr.bf16.mxu1 %v4167_v6  ;;  %3154 = vmatpush2.bf16.msra.mxu0 %v4210_v15  ;;  %v4318_v6 = vld [vmem:[#allocation13 + $0x300] ss:$16 sps:$4 sm:$0xff]  }
 0x267   :  { %3155 = vmatprep.subr.bf16.mxu0 %v4215_v17 }
 0x269   :  { %2317 = vmatpush2.bf16.msra.mxu1 %v4165_v10  ;;  %v4326_v10 = vld [vmem:[#allocation13 + $0x2ec] ss:$16 sps:$4 sm:$0xff]  }
 0x26a   :  { %2318 = vmatprep.subr.bf16.mxu1 %v4170_v12  ;;  %3156 = vmatpush2.bf16.msra.mxu0 %v4213_v20  ;;  %v1514_v12 = vrot.slane %v4697_v11, %v4647_v34 }
 0x26b   :  { %3157 = vmatprep.subr.bf16.mxu0 %v4218_v22 }
 0x26d   :  { %2319 = vmatpush2.bf16.msra.mxu1 %v4168_v14 }
 0x26e   :  { %2320 = vmatprep.subr.bf16.mxu1 %v4173_v16  ;;  %3158 = vmatpush2.bf16.msra.mxu0 %v4216_v23 }
 0x26f   :  { %3159 = vmatprep.subr.bf16.mxu0 %v4221_v19 }
 0x271   :  { %2321 = vmatpush2.bf16.msra.mxu1 %v4171_v18 }
 0x272   :  { %2322 = vmatprep.subr.bf16.mxu1 %v4176_v21  ;;  %3160 = vmatpush2.bf16.msra.mxu0 %v4219_v25 }
 0x273   :  { %3161 = vmatprep.subr.bf16.mxu0 %v4224_v27 }
 0x275   :  { %2323 = vmatpush2.bf16.msra.mxu1 %v4174_v7 }
 0x276   :  { %2324 = vmatprep.subr.bf16.mxu1 %v4179_v8  ;;  %3162 = vmatpush2.bf16.msra.mxu0 %v4222_v28  ;;  %v4231_v28 = vld [vmem:[#allocation13 + $0xe8] ss:$16 sps:$4 sm:$0xff]  }
 0x277   :  { %3163 = vmatprep.subr.bf16.mxu0 %v4227_v30 }
 0x279   :  { %2325 = vmatpush2.bf16.msra.mxu1 %v4177_v24 }
 0x27a   :  { %3164 = vmatpush2.bf16.msra.mxu0 %v4225_v31  ;;  %3174 = vmatprep.subr.bf16.mxu1 %v4230_v33  ;;  %v4239_v31 = vld [vmem:[#allocation13 + $0xcc] ss:$16 sps:$4 sm:$0xff]  }
 0x27b   :  { %3215 = vmatprep.subr.bf16.mxu0 %v4233_v36  ;;  %v4245_v33 = vld [vmem:[#allocation13 + $0xac] ss:$16 sps:$4 sm:$0xff]   ;;  %v4243_v36 = vld [vmem:[#allocation13 + $0xa8] ss:$16 sps:$4 sm:$0xff]  }
 0x27c   :  { %2327 = vmatmul.mubr.bf16.vlgmr.msra.gmra.mxu1 %v4689_v26  ;;  %v4242_v26 = vld [vmem:[#allocation13 + $0x2a4] ss:$16 sps:$4 sm:$0xff]  }
 0x27d   :  { %3175 = vmatpush1.bf16.msra.mxu1 %v4228_v32  ;;  %v4237_v32 = vld [vmem:[#allocation13 + $0xc8] ss:$16 sps:$4 sm:$0xff]  }
 0x27e   :  { %3176 = vmatprep.subr.bf16.mxu1 %v4236_v38  ;;  %v4249_v38 = vld [vmem:[#allocation13 + $0x88] ss:$16 sps:$4 sm:$0xff]  }
 0x281   :  { %3177 = vmatpush1.bf16.msra.mxu1 %v4234_v37  ;;  %v4251_v37 = vld [vmem:[#allocation13 + $0x8c] ss:$16 sps:$4 sm:$0xff]  }
 0x282   :  { %3178 = vmatprep.subr.bf16.mxu1 %v4242_v26  ;;  %v4255_v26 = vld [vmem:[#allocation13 + $0x68] ss:$16 sps:$4 sm:$0xff]  }
 0x285   :  { %3179 = vmatpush1.bf16.msra.mxu1 %v4240_v42  ;;  %v4257_v42 = vld [vmem:[#allocation13 + $0x6c] ss:$16 sps:$4 sm:$0xff]  }
 0x286   :  { %3180 = vmatprep.subr.bf16.mxu1 %v4248_v41  ;;  %v4261_v41 = vld [vmem:[#allocation13 + $0x48] ss:$16 sps:$4 sm:$0xff]  }
 0x289   :  { %3181 = vmatpush1.bf16.msra.mxu1 %v4246_v43  ;;  %v4263_v43 = vld [vmem:[#allocation13 + $0x4c] ss:$16 sps:$4 sm:$0xff]  }
 0x28a   :  { %3182 = vmatprep.subr.bf16.mxu1 %v4254_v45  ;;  %v4267_v45 = vld [vmem:[#allocation13 + $0x28] ss:$16 sps:$4 sm:$0xff]  }
 0x28d   :  { %3183 = vmatpush1.bf16.msra.mxu1 %v4252_v44  ;;  %v4269_v44 = vld [vmem:[#allocation13 + $0x2c] ss:$16 sps:$4 sm:$0xff]  }
 0x28e   :  { %3184 = vmatprep.subr.bf16.mxu1 %v4260_v47  ;;  %v4273_v47 = vld [vmem:[#allocation13 + $0x8] ss:$16 sps:$4 sm:$0xff]  }
 0x291   :  { %3185 = vmatpush1.bf16.msra.mxu1 %v4258_v46  ;;  %v4275_v46 = vld [vmem:[#allocation13 + $0xc] ss:$16 sps:$4 sm:$0xff]  }
 0x292   :  { %3186 = vmatprep.subr.bf16.mxu1 %v4266_v49  ;;  %v4279_v49 = vld [vmem:[#allocation13 + $0x1e8] ss:$16 sps:$4 sm:$0xff]  }
 0x295   :  { %3187 = vmatpush1.bf16.msra.mxu1 %v4264_v48  ;;  %v4281_v48 = vld [vmem:[#allocation13 + $0x1ec] ss:$16 sps:$4 sm:$0xff]  }
 0x296   :  { %3188 = vmatprep.subr.bf16.mxu1 %v4272_v51  ;;  %v4285_v51 = vld [vmem:[#allocation13 + $0x1c8] ss:$16 sps:$4 sm:$0xff]  }
 0x299   :  { %3189 = vmatpush1.bf16.msra.mxu1 %v4270_v50  ;;  %v4287_v50 = vld [vmem:[#allocation13 + $0x1cc] ss:$16 sps:$4 sm:$0xff]  }
 0x29a   :  { %3190 = vmatprep.subr.bf16.mxu1 %v4278_v53  ;;  %v4291_v53 = vld [vmem:[#allocation13 + $0x1a8] ss:$16 sps:$4 sm:$0xff]  }
 0x29d   :  { %3191 = vmatpush2.bf16.msra.mxu1 %v4276_v52  ;;  %v4293_v52 = vld [vmem:[#allocation13 + $0x1ac] ss:$16 sps:$4 sm:$0xff]  }
 0x29e   :  { %3192 = vmatprep.subr.bf16.mxu1 %v4284_v55  ;;  %v4297_v55 = vld [vmem:[#allocation13 + $0x188] ss:$16 sps:$4 sm:$0xff]  }
 0x2a1   :  { %3193 = vmatpush2.bf16.msra.mxu1 %v4282_v54  ;;  %v4299_v54 = vld [vmem:[#allocation13 + $0x18c] ss:$16 sps:$4 sm:$0xff]  }
 0x2a2   :  { %3194 = vmatprep.subr.bf16.mxu1 %v4290_v57  ;;  %v4303_v57 = vld [vmem:[#allocation13 + $0x168] ss:$16 sps:$4 sm:$0xff]  }
 0x2a5   :  { %3195 = vmatpush2.bf16.msra.mxu1 %v4288_v56  ;;  %v4305_v56 = vld [vmem:[#allocation13 + $0x16c] ss:$16 sps:$4 sm:$0xff]  }
 0x2a6   :  { %3196 = vmatprep.subr.bf16.mxu1 %v4296_v59  ;;  %v1522_v59 = vrot.slane %v4697_v11, %v4650_v35 }
 0x2a9   :  { %3197 = vmatpush2.bf16.msra.mxu1 %v4294_v58  ;;  %v4311_v58 = vld [vmem:[#allocation13 + $0x14c] ss:$16 sps:$4 sm:$0xff]  }
 0x2aa   :  { %3198 = vmatprep.subr.bf16.mxu1 %v4302_v61  ;;  %v4317_v61 = vld [vmem:[#allocation13 + $0x12c] ss:$16 sps:$4 sm:$0xff]  }
 0x2ad   :  { %3199 = vmatpush2.bf16.msra.mxu1 %v4300_v60  ;;  %v4309_v60 = vld [vmem:[#allocation13 + $0x148] ss:$16 sps:$4 sm:$0xff]  }
 0x2ae   :  { %3200 = vmatprep.subr.bf16.mxu1 %v4308_v63 }
 0x2b1   :  { %3201 = vmatpush2.bf16.msra.mxu1 %v4306_v62  ;;  %v1526_v62 = vrot.slane %v4697_v11, %v4659_v40 }
 0x2b2   :  { %3202 = vmatprep.subr.bf16.mxu1 %v4314_v0  ;;  %v4315_v0 = vld [vmem:[#allocation13 + $0x128] ss:$16 sps:$4 sm:$0xff]  }
 0x2b5   :  { %3203 = vmatpush2.bf16.msra.mxu1 %v4312_v2  ;;  %v4323_v2 = vld [vmem:[#allocation13 + $0x10c] ss:$16 sps:$4 sm:$0xff]  }
 0x2b6   :  { %3204 = vmatprep.subr.bf16.mxu1 %v4320_v4 }
 0x2b9   :  { %3205 = vmatpush2.bf16.msra.mxu1 %v4318_v6 }
 0x2ba   :  { %3256 = vmatprep.subr.bf16.mxu1 %v4326_v10 }
 0x2bc   :  { %v2205_v1 = vpop.f32.mrf.mxu0 }
 0x2bd   :  { %v2206_v14 = vadd.f32 %v2205_v1, %v1514_v12 }
 0x2be   :  { %v2207_v3 = vpop.f32.mrf.mxu0 }
 0x2bf   :  { %v2208_v17 = vadd.f32 %v2207_v3, %v1518_v13 }
 0x2c0   :  { %v2209_v5 = vpop.f32.mrf.mxu0 }
 0x2c2   :  { %v2210_v9 = vpop.f32.mrf.mxu0 }
 0x2c3   :  { %v4321_v9 = vld [vmem:[#allocation13 + $0x108] ss:$16 sps:$4 sm:$0xff]  }
 0x2fc   :  { %v2246_v15 = vpop.f32.mrf.mxu1  ;;  %v4703_v16 = vpop.f32.mrf.mxu0 }
 0x2fd   :  { %v2247_v18 = vadd.f32 %v2246_v15, %v2206_v14  ;;  %v2288_v63 = vadd.f32 %v4703_v16, %v1522_v59  ;;  %v4324_v15 = vld [vmem:[#allocation13 + $0x2e8] ss:$16 sps:$4 sm:$0xff]  }
 0x2fe   :  { %v2248_v20 = vpop.f32.mrf.mxu1  ;;  %v4705_v21 = vpop.f32.mrf.mxu0 }
 0x2ff   :  { %v2249_v22 = vadd.f32 %v2248_v20, %v2208_v17  ;;  %v2335_v7 = vmax.f32 %v2247_v18, 0.0  ;;  %v2290_v3 = vadd.f32 %v4705_v21, %v1526_v62  ;;  %v4329_v17 = vld [vmem:[#allocation13 + $0x2cc] ss:$16 sps:$4 sm:$0xff]   ;;  %v4327_v18 = vld [vmem:[#allocation13 + $0x2c8] ss:$16 sps:$4 sm:$0xff]  }
 0x300   :  { %v2250_v23 = vpop.f32.mrf.mxu1  ;;  %v2291_v8 = vpop.f32.mrf.mxu0  ;;  %v4332_v20 = vld [vmem:[#allocation13 + $0x2ac] ss:$16 sps:$4 sm:$0xff]   ;;  %v4330_v21 = vld [vmem:[#allocation13 + $0x2a8] ss:$16 sps:$4 sm:$0xff]  }
 0x301   :  { %v2336_v19 = vmax.f32 %v2249_v22, 0.0  ;;  %v4707_v30 = vpack.c.bf16 %v2335_v7, %v2335_v7  ;;  %v4335_v22 = vld [vmem:[#allocation13 + $0x28c] ss:$16 sps:$4 sm:$0xff]   ;;  %v4333_v7 = vld [vmem:[#allocation13 + $0x288] ss:$16 sps:$4 sm:$0xff]  }
 0x302   :  { %v2251_v24 = vpop.f32.mrf.mxu1  ;;  %v2292_v25 = vpop.f32.mrf.mxu0  ;;  %v4338_v23 = vld [vmem:[#allocation13 + $0x26c] ss:$16 sps:$4 sm:$0xff]   ;;  %v4336_v8 = vld [vmem:[#allocation13 + $0x268] ss:$16 sps:$4 sm:$0xff]  }
 0x303   :  { %v2340_v27 = vpack.c.bf16 %v2336_v19, %v2336_v19  ;;  %v4341_v19 = vld [vmem:[#allocation13 + $0x24c] ss:$16 sps:$4 sm:$0xff]   ;;  %v4339_v24 = vld [vmem:[#allocation13 + $0x248] ss:$16 sps:$4 sm:$0xff]  }
 0x304   :  { %v4344_v25 = vld [vmem:[#allocation13 + $0x22c] ss:$16 sps:$4 sm:$0xff]  }
 0x305   :  { %3165 = vmatprep.mubr.bf16.mxu0 %v2340_v27 }
 0x306   :  { %3166 = vmatmul.mubr.bf16.vlgmr.msra.gmra.mxu0 %v4707_v30 }
 0x307   :  { %3216 = vmatpush1.bf16.msra.mxu0 %v4231_v28  ;;  %3247 = vmatprep.mubr.bf16.mxu0 %v2340_v27  ;;  %v4342_v27 = vld [vmem:[#allocation13 + $0x228] ss:$16 sps:$4 sm:$0xff]   ;;  %v4347_v28 = vld [vmem:[#allocation13 + $0x20c] ss:$16 sps:$4 sm:$0xff]  }
 0x308   :  { %3217 = vmatprep.subr.bf16.mxu0 %v4239_v31  ;;  %v4350_v31 = vld [vmem:[#allocation13 + $0x3ec] ss:$16 sps:$4 sm:$0xff]  }
 0x30b   :  { %3218 = vmatpush1.bf16.msra.mxu0 %v4237_v32  ;;  %v4348_v32 = vld [vmem:[#allocation13 + $0x3e8] ss:$16 sps:$4 sm:$0xff]  }
 0x30c   :  { %3219 = vmatprep.subr.bf16.mxu0 %v4245_v33  ;;  %v4353_v33 = vld [vmem:[#allocation13 + $0x3cc] ss:$16 sps:$4 sm:$0xff]  }
 0x30f   :  { %3220 = vmatpush1.bf16.msra.mxu0 %v4243_v36  ;;  %v4351_v36 = vld [vmem:[#allocation13 + $0x3c8] ss:$16 sps:$4 sm:$0xff]  }
 0x310   :  { %3221 = vmatprep.subr.bf16.mxu0 %v4251_v37  ;;  %v4356_v37 = vld [vmem:[#allocation13 + $0x3ac] ss:$16 sps:$4 sm:$0xff]  }
 0x313   :  { %3222 = vmatpush1.bf16.msra.mxu0 %v4249_v38  ;;  %v4354_v38 = vld [vmem:[#allocation13 + $0x3a8] ss:$16 sps:$4 sm:$0xff]  }
 0x314   :  { %3223 = vmatprep.subr.bf16.mxu0 %v4257_v42  ;;  %v4359_v42 = vld [vmem:[#allocation13 + $0x38c] ss:$16 sps:$4 sm:$0xff]  }
 0x317   :  { %3224 = vmatpush1.bf16.msra.mxu0 %v4255_v26  ;;  %v4357_v26 = vld [vmem:[#allocation13 + $0x388] ss:$16 sps:$4 sm:$0xff]  }
 0x318   :  { %3225 = vmatprep.subr.bf16.mxu0 %v4263_v43  ;;  %v4362_v43 = vld [vmem:[#allocation13 + $0x36c] ss:$16 sps:$4 sm:$0xff]  }
 0x31b   :  { %3226 = vmatpush1.bf16.msra.mxu0 %v4261_v41  ;;  %v4360_v41 = vld [vmem:[#allocation13 + $0x368] ss:$16 sps:$4 sm:$0xff]  }
 0x31c   :  { %3227 = vmatprep.subr.bf16.mxu0 %v4269_v44  ;;  %v4365_v44 = vld [vmem:[#allocation13 + $0x34c] ss:$16 sps:$4 sm:$0xff]  }
 0x31f   :  { %3228 = vmatpush1.bf16.msra.mxu0 %v4267_v45  ;;  %v4363_v45 = vld [vmem:[#allocation13 + $0x348] ss:$16 sps:$4 sm:$0xff]  }
 0x320   :  { %3229 = vmatprep.subr.bf16.mxu0 %v4275_v46  ;;  %v4368_v46 = vld [vmem:[#allocation13 + $0x32c] ss:$16 sps:$4 sm:$0xff]  }
 0x323   :  { %3230 = vmatpush1.bf16.msra.mxu0 %v4273_v47  ;;  %v4366_v47 = vld [vmem:[#allocation13 + $0x328] ss:$16 sps:$4 sm:$0xff]  }
 0x324   :  { %3231 = vmatprep.subr.bf16.mxu0 %v4281_v48  ;;  %v4371_v48 = vld [vmem:[#allocation13 + $0x30c] ss:$16 sps:$4 sm:$0xff]  }
 0x327   :  { %3232 = vmatpush2.bf16.msra.mxu0 %v4279_v49  ;;  %v4369_v49 = vld [vmem:[#allocation13 + $0x308] ss:$16 sps:$4 sm:$0xff]  }
 0x328   :  { %3233 = vmatprep.subr.bf16.mxu0 %v4287_v50 }
 0x32b   :  { %3234 = vmatpush2.bf16.msra.mxu0 %v4285_v51 }
 0x32c   :  { %3235 = vmatprep.subr.bf16.mxu0 %v4293_v52 }
 0x32f   :  { %3236 = vmatpush2.bf16.msra.mxu0 %v4291_v53 }
 0x330   :  { %3237 = vmatprep.subr.bf16.mxu0 %v4299_v54  ;;  %v2471_v54 = vld [vmem:[%s4752_s10] sm:$0xf] }
 0x333   :  { %3238 = vmatpush2.bf16.msra.mxu0 %v4297_v55  ;;  %v3301_v55 = vld [vmem:[%s4753_s11] sm:$0xf] }
 0x334   :  { %3239 = vmatprep.subr.bf16.mxu0 %v4305_v56  ;;  %v2476_v56 = vrot.slane %v2471_v54, %v4647_v34 }
 0x337   :  { %3240 = vmatpush2.bf16.msra.mxu0 %v4303_v57  ;;  %v3302_v57 = vunpack.c.l.bf16 %v3301_v55 }
 0x338   :  { %3241 = vmatprep.subr.bf16.mxu0 %v4311_v58  ;;  %v2480_v58 = vrot.slane %v2471_v54, %v4656_v39 }
 0x33b   :  { %3242 = vmatpush2.bf16.msra.mxu0 %v4309_v60  ;;  %v3307_v60 = vrot.slane %v3302_v57, %v4647_v34 }
 0x33c   :  { %v2328_v1 = vpop.f32.mrf.mxu1  ;;  %3243 = vmatprep.subr.bf16.mxu0 %v4317_v61  ;;  %v3311_v61 = vrot.slane %v3302_v57, %v4650_v35 }
 0x33d   :  { %v2329_v4 = vadd.f32 %v2328_v1, %v2288_v63 }
 0x33e   :  { %v2330_v5 = vpop.f32.mrf.mxu1 }
 0x33f   :  { %v2331_v6 = vadd.f32 %v2330_v5, %v2290_v3  ;;  %3244 = vmatpush2.bf16.msra.mxu0 %v4315_v0  ;;  %v2337_v10 = vmax.f32 %v2329_v4, 0.0  ;;  %v3327_v5 = vrot.slane %v3307_v60, %v4647_v34 }
 0x340   :  { %v2332_v12 = vpop.f32.mrf.mxu1  ;;  %3245 = vmatprep.subr.bf16.mxu0 %v4323_v2 }
 0x341   :  { %v2338_v13 = vmax.f32 %v2331_v6, 0.0  ;;  %v4716_v16 = vpack.c.bf16 %v2337_v10, %v2337_v10 }
 0x342   :  { %v2333_v14 = vpop.f32.mrf.mxu1 }
 0x343   :  { %v2342_v11 = vpack.c.bf16 %v2338_v13, %v2338_v13  ;;  %3246 = vmatpush2.bf16.msra.mxu0 %v4321_v9  ;;  %v3331_v9 = vrot.slane %v3311_v61, %v4647_v34 }
 0x345   :  { %3206 = vmatprep.mubr.bf16.mxu1 %v2342_v11 }
 0x346   :  { %3207 = vmatmul.mubr.bf16.vlgmr.msra.gmra.mxu1 %v4716_v16  ;;  %3248 = vmatmul.mubr.bf16.vlgmr.msra.gmra.mxu0 %v4707_v30  ;;  %v4345_v30 = vld [vmem:[#allocation13 + $0x208] ss:$16 sps:$4 sm:$0xff]  }
 0x347   :  { %3257 = vmatpush1.bf16.msra.mxu1 %v4324_v15  ;;  %3288 = vmatprep.mubr.bf16.mxu1 %v2342_v11 }
 0x348   :  { %3258 = vmatprep.subr.bf16.mxu1 %v4329_v17  ;;  %v3314_v17 = vsub.s32 4, %v4644_v29 }
 0x34b   :  { %3259 = vmatpush1.bf16.msra.mxu1 %v4327_v18  ;;  %v2484_v18 = vrot.slane %v2471_v54, %v4650_v35 }
 0x34c   :  { %3260 = vmatprep.subr.bf16.mxu1 %v4332_v20  ;;  %v3318_v20 = vsub.s32 6, %v4644_v29 }
 0x34f   :  { %3261 = vmatpush1.bf16.msra.mxu1 %v4330_v21  ;;  %v2488_v21 = vrot.slane %v2471_v54, %v4659_v40 }
 0x350   :  { %3262 = vmatprep.subr.bf16.mxu1 %v4335_v22  ;;  %v3315_v22 = vrot.slane %v3302_v57, %v3314_v17 }
 0x353   :  { %3263 = vmatpush1.bf16.msra.mxu1 %v4333_v7 }
 0x354   :  { %3264 = vmatprep.subr.bf16.mxu1 %v4338_v23  ;;  %v3319_v23 = vrot.slane %v3302_v57, %v3318_v20 }
 0x357   :  { %3265 = vmatpush1.bf16.msra.mxu1 %v4336_v8 }
 0x358   :  { %3266 = vmatprep.subr.bf16.mxu1 %v4341_v19 }
 0x35b   :  { %3267 = vmatpush1.bf16.msra.mxu1 %v4339_v24 }
 0x35c   :  { %3268 = vmatprep.subr.bf16.mxu1 %v4344_v25  ;;  %v3335_v25 = vrot.slane %v3315_v22, %v4647_v34 }
 0x35f   :  { %3269 = vmatpush1.bf16.msra.mxu1 %v4342_v27 }
 0x360   :  { %3270 = vmatprep.subr.bf16.mxu1 %v4347_v28 }
 0x363   :  { %3271 = vmatpush1.bf16.msra.mxu1 %v4345_v30 }
 0x364   :  { %3272 = vmatprep.subr.bf16.mxu1 %v4350_v31  ;;  %v3339_v31 = vrot.slane %v3319_v23, %v4647_v34 }
 0x367   :  { %3273 = vmatpush2.bf16.msra.mxu1 %v4348_v32 }
 0x368   :  { %3274 = vmatprep.subr.bf16.mxu1 %v4353_v33 }
 0x36b   :  { %3275 = vmatpush2.bf16.msra.mxu1 %v4351_v36 }
 0x36c   :  { %3276 = vmatprep.subr.bf16.mxu1 %v4356_v37 }
 0x36f   :  { %3277 = vmatpush2.bf16.msra.mxu1 %v4354_v38  ;;  %v3771_v38 = vld [vmem:[#allocation2] ss:$0 sm:$0xff] }
 0x370   :  { %3278 = vmatprep.subr.bf16.mxu1 %v4359_v42 }
 0x373   :  { %3279 = vmatpush2.bf16.msra.mxu1 %v4357_v26 }
 0x374   :  { %3280 = vmatprep.subr.bf16.mxu1 %v4362_v43 }
 0x377   :  { %3281 = vmatpush2.bf16.msra.mxu1 %v4360_v41 }
 0x378   :  { %3282 = vmatprep.subr.bf16.mxu1 %v4365_v44 }
 0x37b   :  { %3283 = vmatpush2.bf16.msra.mxu1 %v4363_v45 }
 0x37c   :  { %3284 = vmatprep.subr.bf16.mxu1 %v4368_v46 }
 0x37f   :  { %3285 = vmatpush2.bf16.msra.mxu1 %v4366_v47 }
 0x380   :  { %3286 = vmatprep.subr.bf16.mxu1 %v4371_v48 }
 0x383   :  { %3287 = vmatpush2.bf16.msra.mxu1 %v4369_v49 }
 0x386   :  { %3289 = vmatmul.mubr.bf16.vlgmr.msra.gmra.mxu1 %v4716_v16 }
 0x3c6   :  { %v3167_v50 = vpop.f32.mrf.mxu0 }
 0x3c7   :  { %v3168_v59 = vadd.f32 %v3167_v50, %v2476_v56 }
 0x3c8   :  { %v3169_v51 = vpop.f32.mrf.mxu0 }
 0x3c9   :  { %v3170_v0 = vadd.f32 %v3169_v51, %v2480_v58 }
 0x3ca   :  { %v3171_v52 = vpop.f32.mrf.mxu0 }
 0x3cc   :  { %v3172_v53 = vpop.f32.mrf.mxu0 }
 0x406   :  { %v3208_v62 = vpop.f32.mrf.mxu1  ;;  %v3249_v63 = vpop.f32.mrf.mxu0 }
 0x407   :  { %v3209_v1 = vadd.f32 %v3208_v62, %v3168_v59  ;;  %v3250_v7 = vadd.f32 %v3249_v63, %v2484_v18 }
 0x408   :  { %v3210_v2 = vpop.f32.mrf.mxu1  ;;  %v3251_v3 = vpop.f32.mrf.mxu0 }
 0x409   :  { %v3297_v4 = vmax.f32 %v3209_v1, 0.0  ;;  %v3211_v6 = vadd.f32 %v3210_v2, %v3170_v0  ;;  %v3252_v19 = vadd.f32 %v3251_v3, %v2488_v21 }
 0x40a   :  { %v3212_v10 = vpop.f32.mrf.mxu1  ;;  %v3253_v12 = vpop.f32.mrf.mxu0 }
 0x40b   :  { %v3298_v39 = vmax.f32 %v3211_v6, 0.0  ;;  %v3340_v11 = vmul.f32 %v3327_v5, %v3297_v4 }
 0x40c   :  { %v3213_v13 = vpop.f32.mrf.mxu1  ;;  %v3254_v14 = vpop.f32.mrf.mxu0 }
 0x40d   :  { %v3341_v15 = vmul.f32 %v3331_v9, %v3298_v39 }
 0x40f   :  { %v3344_v16 = vadd.f32 %v3341_v15, %v3340_v11 }
 0x446   :  { %v3290_v8 = vpop.f32.mrf.mxu1 }
 0x447   :  { %v3291_v24 = vadd.f32 %v3290_v8, %v3250_v7 }
 0x448   :  { %v3292_v27 = vpop.f32.mrf.mxu1 }
 0x449   :  { %v3299_v28 = vmax.f32 %v3291_v24, 0.0  ;;  %v3293_v30 = vadd.f32 %v3292_v27, %v3252_v19 }
 0x44a   :  { %v3294_v32 = vpop.f32.mrf.mxu1 }
 0x44b   :  { %v3342_v33 = vmul.f32 %v3335_v25, %v3299_v28  ;;  %v3300_v35 = vmax.f32 %v3293_v30, 0.0 }
 0x44c   :  { %v3295_v36 = vpop.f32.mrf.mxu1 }
 0x44d   :  { %v3343_v29 = vmul.f32 %v3339_v31, %v3300_v35  ;;  %v3345_v37 = vadd.f32 %v3344_v16, %v3342_v33 }
 0x44f   :  { %v3346_v40 = vadd.f32 %v3345_v37, %v3343_v29 }
 0x451   :  { %3347 = vadd.xlane.f32.xlu0 %v3346_v40 }
 0x4da   :  { %v3348_v42 = vpop.xlane.xlu0 %3347 }
 0x4db   :  { %v3356_v26 = vadd.f32 %v3771_v38, %v3348_v42 }
 0x4dd   :  { %3358 = vst.msk [vmem:[%s4755_s13] sm:$0xff] %vm3357_vm3, %v3356_v26 }
 0x4de   :  { %3363 = vsyncpa [#allocation4], 1 }
 0x4df   :  { %3364 = vsyncpa [#allocation6], 1 }
 0x4e0   :  { %3365 = vsyncpa [#allocation9], 1 }
 0x4e1   :  { %3366 = vsyncpa [#allocation12], 1 }

</bundles_post_ra>
